<compile_context>
chip_gen: v5e
topology: v5e:2x2
jax: 0.10.0
libtpu: 0.0.40
codegen_flags: <defaults>
</compile_context>

<pallas_src>
import math
import random
from fractions import Fraction

import jax
import jax.numpy as jnp
from jax import lax
from jax.experimental import pallas as pl
from jax.experimental.pallas import tpu as pltpu


def _round_up(x, m):
    return ((x + m - 1) // m) * m


# -------------------------- Pallas kernel --------------------------

def _banded_resample_kernel(xb_ref, w_ref, o_ref):
    # xb_ref: (1, c_pad, band_k) bf16 -- input band feeding this output tile
    # w_ref:  (band_k, tn)       bf16 -- tile-invariant weights (VMEM-resident)
    # o_ref:  (c_pad, tn)        f32
    o_ref[...] = jnp.dot(
        xb_ref[0], w_ref[...], preferred_element_type=jnp.float32
    )


def _pallas_banded_resample(x_bands, w, c_pad, out_pad, tn, band_k, n_tiles):
    cost = pl.CostEstimate(
        flops=2 * c_pad * band_k * tn * n_tiles,
        transcendentals=0,
        bytes_accessed=(n_tiles * c_pad * band_k * 2   # per-tile bands (bf16)
                        + band_k * tn * 2              # single resident weight block
                        + c_pad * out_pad * 4),        # f32 output
    )
    return pl.pallas_call(
        _banded_resample_kernel,
        out_shape=jax.ShapeDtypeStruct((c_pad, out_pad), jnp.float32),
        grid=(n_tiles,),
        in_specs=[
            pl.BlockSpec((1, c_pad, band_k), lambda j: (j, 0, 0)),
            # constant block index -> fetched once, stays resident in VMEM
            pl.BlockSpec((band_k, tn), lambda j: (0, 0)),
        ],
        out_specs=pl.BlockSpec((c_pad, tn), lambda j: (0, j)),
        compiler_params=pltpu.CompilerParams(
            dimension_semantics=("parallel",)
        ),
        cost_estimate=cost,
    )(x_bands, w)


# -------------------------- operand construction (plain JAX / XLA) --------------------------

def _build_banded_operands(audio_data, speed_factor, zero_crossings=16, rolloff=0.945):
    """Build per-tile bf16 input bands and the single tile-invariant bf16 weight block.

    Returns (x_bands (J, c_pad, band_k) bf16, w (band_k, tn) bf16, dims).
    """
    c, t = audio_data.shape

    # Exact rational speed (0.9 -> 9/10, 1.1 -> 11/10): with tn = lcm(128, den)
    # each output tile advances the input by an integer number of samples, so
    # the banded weights are identical for every tile (polyphase periodicity).
    frac = Fraction(speed_factor).limit_denominator(64)
    num, den = frac.numerator, frac.denominator
    tn = math.lcm(128, den)
    assert tn <= 2560, (
        f"speed_factor={speed_factor}: polyphase period too long for one tile")
    speed = num / den

    cutoff_f = rolloff * min(1.0, den / num)
    width_f = zero_crossings / cutoff_f
    width_int = int(math.ceil(width_f)) + 1

    out_len = (t * den + num - 1) // num            # ceil(T / speed) exactly
    n_tiles = -(-out_len // tn)
    if n_tiles > 1 and n_tiles % 2 == 1:
        n_tiles += 1                                # even split across v7x's 2 TCs
    out_pad = n_tiles * tn

    tn_speed = tn * num // den                      # integer input advance per tile
    # band wide enough to hold every non-zero tap of one output tile
    band_k = _round_up(tn_speed + 2 * width_int + 2, 128)

    c_pad = max(8, _round_up(c, 8))
    # left pad by width_int so the first band never clamps; right pad so the
    # last band never reads out of range
    x_pad_len = _round_up(max(width_int + t, (n_tiles - 1) * tn_speed + band_k), 128)

    x_pad = jnp.zeros((c_pad, x_pad_len), jnp.bfloat16)
    x_pad = x_pad.at[:c, width_int:width_int + t].set(audio_data.astype(jnp.bfloat16))

    # gather overlapping input bands: (J, c_pad, band_k); band j starts at j*tn_speed
    starts = jnp.arange(n_tiles, dtype=jnp.int32) * tn_speed
    x_bands = jax.vmap(
        lambda s: lax.dynamic_slice(x_pad, (0, s), (c_pad, band_k))
    )(starts)

    # tile-invariant banded windowed-sinc weights, (band_k, tn):
    #   output q (within a tile) is centered width_int + q*speed samples past
    #   the band start, so t_off(r, q) = r - width_int - q*speed
    r_idx = jnp.arange(band_k, dtype=jnp.float32)[:, None]
    q_idx = jnp.arange(tn, dtype=jnp.float32)[None, :]
    t_off = r_idx - jnp.float32(width_int) - q_idx * jnp.float32(speed)
    width = jnp.float32(width_f)
    cutoff = jnp.float32(cutoff_f)
    window = jnp.where(
        jnp.abs(t_off) < width,
        0.5 * (1.0 + jnp.cos(jnp.pi * t_off / width)),
        0.0,
    )
    w = cutoff * jnp.sinc(cutoff * t_off) * window
    # normalize per output sample so DC gain ~ 1 (band covers all non-zero taps)
    w = w / jnp.maximum(jnp.sum(w, axis=0, keepdims=True), 1e-8)
    w = w.astype(jnp.bfloat16)

    dims = (c, t, c_pad, out_len, out_pad, n_tiles, band_k, tn)
    return x_bands, w, dims


# -------------------------- module forward --------------------------

def random_speed_change(audio_data, sample_rate, speed_factor):
    """Equivalent of RandomSpeedChange.forward with the random factor made explicit.

    audio_data: (C, T) (or (B*C, T) stacked rows).  Returns
    (C, ceil(T/speed_factor)) float32, or the float32-cast input unchanged
    when speed_factor == 1.0.
    """
    del sample_rate  # rate is unchanged; only the length changes
    if abs(speed_factor - 1.0) < 1e-9:
        return audio_data.astype(jnp.float32)

    x_bands, w, dims = _build_banded_operands(audio_data, speed_factor)
    c, _, c_pad, out_len, out_pad, n_tiles, band_k, tn = dims
    y_pad = _pallas_banded_resample(x_bands, w, c_pad, out_pad, tn, band_k, n_tiles)
    return y_pad[:c, :out_len]


def random_speed_change_batched(audio_batch, sample_rate, speed_factor):
    """Stack B clips that drew the same speed factor along the row axis so the
    MXU M dimension is filled and the single resident weight block is reused."""
    b, c, t = audio_batch.shape
    y = random_speed_change(audio_batch.reshape(b * c, t), sample_rate, speed_factor)
    return y.reshape(b, c, -1)


def forward(audio_data, sample_rate, rng):
    speed_factor = rng.choice([0.9, 1.0, 1.1])
    return random_speed_change(audio_data, sample_rate, speed_factor), speed_factor


# -------------------------- main --------------------------

if __name__ == "__main__":
    sample_rate = 8000
    C, T = 2, 1024

    key = jax.random.PRNGKey(0)
    audio = jax.random.normal(key, (C, T), dtype=jnp.float32)

    # module-style forward with a deterministic host-side random choice
    rng = random.Random(0)
    out, speed = forward(audio, sample_rate, rng)
    out = jax.block_until_ready(out)

    # exercise the Pallas kernel explicitly on both non-identity factors
    for sf in (0.9, 1.1):
        y = jax.block_until_ready(random_speed_change(audio, sample_rate, sf))
        assert y.shape == (C, math.ceil(T / sf)), (y.shape, sf)
        assert bool(jnp.all(jnp.isfinite(y)))

    # batched path: clips sharing one speed factor fill the MXU M dimension
    audio_b = jax.random.normal(jax.random.PRNGKey(1), (4, C, T), dtype=jnp.float32)
    yb = jax.block_until_ready(random_speed_change_batched(audio_b, sample_rate, 1.1))
    assert yb.shape == (4, C, math.ceil(T / 1.1)), yb.shape
    assert bool(jnp.all(jnp.isfinite(yb)))

    # cross-check the Pallas matmul against an XLA einsum on identical bf16 operands
    xb, wb, dims = _build_banded_operands(audio, 1.1)
    _, _, c_pad, _, out_pad, n_tiles, band_k, tn = dims
    y_pad = jax.block_until_ready(
        _pallas_banded_resample(xb, wb, c_pad, out_pad, tn, band_k, n_tiles)
    )
    ref = jnp.einsum(
        "jck,kq->cjq",
        xb.astype(jnp.float32), wb.astype(jnp.float32),
        precision=jax.lax.Precision.HIGHEST,
    ).reshape(c_pad, out_pad)
    max_err = float(jnp.max(jnp.abs(y_pad - ref)))
    assert max_err < 2e-3, max_err

    print("KERNEL_OK")
</pallas_src>

<mosaic_0001>
module attributes {stable_mosaic.version = 11 : i64} {
  func.func @_banded_resample_kernel(%arg0: i32, %arg1: memref<1x8x640xbf16, #tpu.memory_space<vmem>>, %arg2: memref<640x640xbf16, #tpu.memory_space<vmem>>, %arg3: memref<8x640xf32, #tpu.memory_space<vmem>>) attributes {dimension_semantics = [#tpu.dimension_semantics<parallel>], iteration_bounds = array<i64: 2>, scalar_prefetch = 0 : i64, scratch_operands = 0 : i64, tpu.core_type = #tpu.core_type<tc>, window_params = [{transform_indices = @transform_0, window_bounds = array<i64: 1, 8, 640>}, {pipeline_mode = #tpu.pipeline_mode<synchronous>, transform_indices = @transform_1, window_bounds = array<i64: 640, 640>}, {transform_indices = @transform_2, window_bounds = array<i64: 8, 640>}]} {
    %c0 = arith.constant 0 : index
    %c0_0 = arith.constant 0 : index
    %c0_1 = arith.constant 0 : index
    %0 = vector.load %arg1[%c0, %c0_0, %c0_1] : memref<1x8x640xbf16, #tpu.memory_space<vmem>>, vector<1x8x640xbf16>
    %1 = vector.shape_cast %0 : vector<1x8x640xbf16> to vector<8x640xbf16>
    %c0_2 = arith.constant 0 : index
    %c0_3 = arith.constant 0 : index
    %2 = vector.load %arg2[%c0_2, %c0_3] : memref<640x640xbf16, #tpu.memory_space<vmem>>, vector<640x640xbf16>
    %cst = arith.constant dense<0.000000e+00> : vector<8x640xf32>
    %3 = tpu.matmul %1, %2, %cst {dimension_numbers = #tpu.dot_dimension_numbers<[1], [0], [0], [1], [0, 0, 1, 1], [], []>} : vector<8x640xbf16>, vector<640x640xbf16>, vector<8x640xf32> -> vector<8x640xf32>
    %c0_4 = arith.constant 0 : index
    %c0_5 = arith.constant 0 : index
    %4 = vector.load %arg3[%c0_4, %c0_5] : memref<8x640xf32, #tpu.memory_space<vmem>>, vector<8x640xf32>
    tpu.vector_store %arg3[%c0_4, %c0_5], %3 {strides = array<i32>} : memref<8x640xf32, #tpu.memory_space<vmem>>, vector<8x640xf32>,
    return
  }
  func.func @transform_0(%arg0: i32) -> (i32, i32, i32) {
    %c0_i32 = arith.constant 0 : i32
    %c0_i32_0 = arith.constant 0 : i32
    %c0_i32_1 = arith.constant 0 : i32
    return %arg0, %c0_i32, %c0_i32_0 : i32, i32, i32
  }
  func.func @transform_1(%arg0: i32) -> (i32, i32) {
    %c0_i32 = arith.constant 0 : i32
    %c0_i32_0 = arith.constant 0 : i32
    %c0_i32_1 = arith.constant 0 : i32
    return %c0_i32, %c0_i32_0 : i32, i32
  }
  func.func @transform_2(%arg0: i32) -> (i32, i32) {
    %c0_i32 = arith.constant 0 : i32
    %c0_i32_0 = arith.constant 0 : i32
    return %c0_i32, %arg0 : i32, i32
  }
}

</mosaic_0001>

<bundles_post_ra>
// kernel: tpu_custom_call.1
= control target key start
LH: loop header
LB: loop body
LE: loop exit
PB: predicated region body
PF: predicated region fallthrough
CT: control target
= control target key end

     0   :  { %7 = vsyncpa [#allocation3], 0  ;;  %s3320_s0 = inlined_call_operand.hbm [shape: bf16[2,8,640], index: 0, kind: input, shape index: {}]   ;;  %s3321_s1 = inlined_call_operand.hbm [shape: bf16[640,640], index: 1, kind: input, shape index: {}]   ;;  %s3322_s2 = inlined_call_operand.hbm [shape: f32[8,1280], index: 2, kind: output, shape index: {}]  }
   0x1   :  { %9 = vsyncpa [#allocation3 + $0x1], 0 }
   0x2   :  { %10 = vsyncpa [#allocation6], 0 }
   0x3   :  { %11 = vsyncpa [#allocation4], 0 }
   0x4   :  { %13 = vsyncpa [#allocation4 + $0x1], 0  ;;  %s3132_s9 = smov 0   ;;  %s3134_s10 = smov 0  }
   0x5   :  { %s3136_s11 = smov 0   ;;  %s3138_s12 = smov 0  }
   0x6 LB: > { %s108_s15 = sshll.u32 %s3321_s1, 4  ;;  %s3156_s16 = sadd.s32 4294967295, %s3112_s12   ;;  %s3112_s12 = sphi %s3138_s12, %s3332_s12   ;;  %s3108_s11 = sphi %s3136_s11, %s3331_s11   ;;  %s3104_s10 = sphi %s3134_s10, %s3330_s10   ;;  %s3100_s9 = sphi %s3132_s9, %s3329_s9   ;;  %s109_s15 = int_to_ptr.hbm [resolvable:$true] %s108_s15 }
   0x7   : > { %p1909_p0 = scmp.ge.s32.totalorder %s3112_s12, 1  ;;  %p40_p1 = scmp.eq.s32.totalorder %s3156_s16, 0 }
   0x8   : > { %p97_p2 = scmp.lt.s32.totalorder %s3112_s12, 3  ;;  %s3114_s18 = smov [#allocation5]  }
   0x9   : > { %s110_s19 = sshll.u32 %s3114_s18, 4  ;;  %s3115_s20 = smov 320   ;;  %s111_s19 = int_to_ptr.vmem [resolvable:$true] %s110_s19 }
   0xa   : > { %p3161_p3 = pnand %p1909_p0, %p97_p2  ;;  %s3116_s21 = smov 20  }
   0xb   : > { %s1908_s22 = sadd.s32 4294967294, %s3112_s12   ;;  %s3172_s23 = sadd.s32 1, %s3112_s12  }
   0xc   : > { %p2931_p4 = pneg %p3161_p3  ;;  %s26_s24 = sadd.s32 1, %s3108_s11 }
   0xd   : > { %s23_s25 = ssub.s32 %s3112_s12, %s3172_s23  ;;  %p33_p7 = scmp.ne.s32.totalorder %s3108_s11, %s3104_s10 }
   0xe   : > { %p2932_p6 = pnand %p2931_p4, %p40_p1  ;;  %p24_p8 = scmp.eq.s32.totalorder %s23_s25, 0 }
   0xf   : > { %p34_p9 = scmp.eq.s32.totalorder %s3112_s12, 0  ;;  %p39_p10 = scmp.ne.s32.totalorder %s3104_s10, %s3100_s9 }
  0x10   : > { %2934 = dma.hbm_to_vmem [thread:$0]  (!%p2932_p6), %s109_s15, 25600, %s111_s19, [#allocation6], %s3115_s20, %s3115_s20, %s3116_s21  }
  0x11   : > { %p84_p11 = scmp.eq.s32.totalorder %s3156_s16, 1  ;;  %p35_p12 = por %p34_p9, %p33_p7 }
  0x12   : > { %s3184_s26 = scalar_select %p24_p8, %s3108_s11, %s26_s24  }
  0x13   : > { %p3188_p13 = por %p40_p1, %p39_p10  ;;  %p3192_p0 = por %p84_p11, %p33_p7 }
  0x14   : > { %p90_p2 = scmp.eq.s32.totalorder %s1908_s22, 1  ;;  %p2944_p4 = scmp.lt.s32.totalorder %s3112_s12, 2 }
  0x15   : > { %s124_s29 = sand.u32 1, %s3108_s11   ;;  %s2920_s5 = smul.u32 20, %s3112_s12 }
  0x16   : > { %p3198_p6 = por %p90_p2, %p39_p10  ;;  %s2919_s3 = smul.u32 20, %s124_s29 }
  0x17   : > { %p3202_p8 = pnand %p2944_p4, %p35_p12  ;;  %s133_s8 = scalar_lea.hbm %s3320_s0, %s2920_s5 }
  0x18   : > { %s128_s13 = scalar_lea.vmem [#allocation2], %s2919_s3  ;;  %s135_s15 = sshll.u32 %s133_s8, 4  ;;  %s136_s15 = int_to_ptr.hbm [resolvable:$true] %s135_s15 }
  0x19   : > { %s137_s14 = sshll.u32 %s128_s13, 4  ;;  %s125_s18 = scalar_lea.sflag [#allocation3], %s124_s29  ;;  %s138_s14 = int_to_ptr.vmem [resolvable:$true] %s137_s14 }
  0x1a   : > { %s3012_s19 = sshra.s32 %s136_s15, 4  ;;  %p3016_p9 = pneg %p3202_p8  ;;  %s3013_s19 = int_to_ptr.hbm [resolvable:$true] %s3012_s19 }
  0x1b   : > { %s3014_s20 = scalar_lea.hbm %s3013_s19, 20  ;;  %s3019_s24 = scalar_lea.hbm %s3320_s0, 40 }
  0x1c   : > { %p3015_p7 = scmp.ne.s32.totalorder %s3013_s19, %s3014_s20  ;;  %p3020_p12 = scmp.lt.s32.totalorder %s3013_s19, %s3320_s0 }
  0x1d   : > { %p3021_p2 = scmp.lt.s32.totalorder %s3019_s24, %s3014_s20 }
  0x1e   : > { %p3017_p10 = pnand %p3016_p9, %p3015_p7 }
  0x1f   : > { %p3022_p4 = por %p3021_p2, %p3020_p12 }
  0x20   : > { %p3018_p11 = pneg %p3017_p10 }
  0x22   : > { %p3023_p5 = pnand %p3022_p4, %p3018_p11 }
  0x24   : > { %3026 = shalt.err (!%p3023_p5)
}
  0x25   : > { %2938 = dma.hbm_to_vmem [thread:$0]  (!%p3202_p8), %s136_s15, 320, %s138_s14, %s125_s18  }
  0x26   : > { %146 = sbr.rel (%p3161_p3) target bundleno = 406 (0x196), region = 28  ;;  %s3223_s29 = sand.u32 (!%p3161_p3), 1, %s3104_s10  }
  0x27   : > { %s2921_s3 = smul.u32 (!%p3161_p3), 20, %s3223_s29  ;;  %s149_s6 = scalar_lea.sflag (!%p3161_p3), [#allocation3], %s3223_s29 }
  0x29   : > { %s3227_s7 = scalar_lea.vmem (!%p3161_p3), [#allocation2], %s2921_s3 }
  0x2b   : > { %3087 = dma.done.wait (%p3188_p13), %s149_s6, 320  }
  0x2c   : > { %3089 = vsyncadd (%p3188_p13), %s149_s6, 4294966976 }
  0x2d   : > { %3091 = dma.done.wait (%p40_p1), [#allocation6], 25600  }
  0x2e   : > { %3093 = vsyncadd (%p40_p1), [#allocation6], 4294941696  ;;  %v2057_v0 = vld [vmem:[#allocation5 + $0x118] sm:$0xf]  ;;  %v2755_v1 = vld [vmem:[#allocation5 + $0x128] sm:$0xf0] }
  0x2f   : > { %v2037_v2 = vld [vmem:[#allocation5 + $0xf0] sm:$0xf]  ;;  %v2058_v3 = vor.u32 %v2755_v1, %v2057_v0  ;;  %v2750_v4 = vld [vmem:[#allocation5 + $0x100] sm:$0xf0]  ;;  %v2377_v5 = vld [vmem:[#allocation5 + $0x398] sm:$0xf] }
  0x30   : > { %v2835_v6 = vld [vmem:[#allocation5 + $0x3a8] sm:$0xf0]  ;;  %v2537_v7 = vld [vmem:[#allocation5 + $0x4d8] sm:$0xf]  ;;  %v2038_v8 = vor.u32 %v2750_v4, %v2037_v2  ;;  %v2017_v9 = vld [vmem:[#allocation5 + $0xc8] sm:$0xf] }
  0x31   : > { %1481 = vmatpush.bf16.msra.mxu0 %v2058_v3  ;;  %v2745_v10 = vld [vmem:[#allocation5 + $0xd8] sm:$0xf0]  ;;  %v2378_v11 = vor.u32 %v2835_v6, %v2377_v5  ;;  %v2875_v12 = vld [vmem:[#allocation5 + $0x4e8] sm:$0xf0]  ;;  %v2217_v14 = vld [vmem:[#allocation5 + $0x258] sm:$0xf] }
  0x32   : > { %v2538_v13 = vor.u32 %v2875_v12, %v2537_v7  ;;  %v2795_v15 = vld [vmem:[#allocation5 + $0x268] sm:$0xf0]  ;;  %v2357_v16 = vld [vmem:[#allocation5 + $0x370] sm:$0xf]  ;;  %v2830_v18 = vld [vmem:[#allocation5 + $0x380] sm:$0xf0]  ;;  %v2018_v25 = vor.u32 %v2745_v10, %v2017_v9 }
  0x33   : > { %1507 = vmatpush.bf16.msra.mxu2 %v2378_v11  ;;  %v2218_v17 = vor.u32 %v2795_v15, %v2217_v14  ;;  %v2517_v19 = vld [vmem:[#allocation5 + $0x4b0] sm:$0xf]  ;;  %v2870_v20 = vld [vmem:[#allocation5 + $0x4c0] sm:$0xf0]  ;;  %v1997_v21 = vld [vmem:[#allocation5 + $0xa0] sm:$0xf]  ;;  %v2358_v22 = vor.u32 %v2830_v18, %v2357_v16 }
  0x34   : > { %1520 = vmatpush.bf16.msra.mxu3 %v2538_v13  ;;  %v2518_v23 = vor.u32 %v2870_v20, %v2517_v19  ;;  %v2197_v24 = vld [vmem:[#allocation5 + $0x230] sm:$0xf]  ;;  %v2790_v26 = vld [vmem:[#allocation5 + $0x240] sm:$0xf0]  ;;  %v2337_v27 = vld [vmem:[#allocation5 + $0x348] sm:$0xf] }
  0x35   : > { %1482 = vmatpush.bf16.msra.mxu0 %v2038_v8  ;;  %1494 = vmatpush.bf16.msra.mxu1 %v2218_v17  ;;  %v2825_v28 = vld [vmem:[#allocation5 + $0x358] sm:$0xf0]  ;;  %v2740_v29 = vld [vmem:[#allocation5 + $0xb0] sm:$0xf0]  ;;  %v2198_v30 = vor.u32 %v2790_v26, %v2197_v24  ;;  %v2497_v31 = vld [vmem:[#allocation5 + $0x488] sm:$0xf] }
  0x36   : > { %v2865_v32 = vld [vmem:[#allocation5 + $0x498] sm:$0xf0]  ;;  %v2338_v33 = vor.u32 %v2825_v28, %v2337_v27  ;;  %v2177_v34 = vld [vmem:[#allocation5 + $0x208] sm:$0xf]  ;;  %v2317_v37 = vld [vmem:[#allocation5 + $0x320] sm:$0xf]  ;;  %v1998_v39 = vor.u32 %v2740_v29, %v1997_v21 }
  0x37   : > { %1508 = vmatpush.bf16.msra.mxu2 %v2358_v22  ;;  %v2785_v35 = vld [vmem:[#allocation5 + $0x218] sm:$0xf0]  ;;  %v2498_v36 = vor.u32 %v2865_v32, %v2497_v31  ;;  %v2820_v38 = vld [vmem:[#allocation5 + $0x330] sm:$0xf0]  ;;  %v1977_v40 = vld [vmem:[#allocation5 + $0x78] sm:$0xf] }
  0x38   : > { %1521 = vmatpush.bf16.msra.mxu3 %v2518_v23  ;;  %v2178_v41 = vor.u32 %v2785_v35, %v2177_v34  ;;  %v2477_v42 = vld [vmem:[#allocation5 + $0x460] sm:$0xf]  ;;  %v2860_v43 = vld [vmem:[#allocation5 + $0x470] sm:$0xf0]  ;;  %v2735_v44 = vld [vmem:[#allocation5 + $0x88] sm:$0xf0]  ;;  %v2318_v47 = vor.u32 %v2820_v38, %v2317_v37 }
  0x39   : > { %1483 = vmatpush.bf16.msra.mxu0 %v2018_v25  ;;  %1495 = vmatpush.bf16.msra.mxu1 %v2198_v30  ;;  %v2157_v45 = vld [vmem:[#allocation5 + $0x1e0] sm:$0xf]  ;;  %v2780_v46 = vld [vmem:[#allocation5 + $0x1f0] sm:$0xf0]  ;;  %v2478_v48 = vor.u32 %v2860_v43, %v2477_v42  ;;  %v2297_v49 = vld [vmem:[#allocation5 + $0x2f8] sm:$0xf]  ;;  %v1978_v51 = vor.u32 %v2735_v44, %v1977_v40 }
  0x3a   : > { %v2815_v50 = vld [vmem:[#allocation5 + $0x308] sm:$0xf0]  ;;  %v1957_v52 = vld [vmem:[#allocation5 + $0x50] sm:$0xf]  ;;  %v2158_v53 = vor.u32 %v2780_v46, %v2157_v45  ;;  %v2457_v54 = vld [vmem:[#allocation5 + $0x438] sm:$0xf] }
  0x3b   : > { %1509 = vmatpush.bf16.msra.mxu2 %v2338_v33  ;;  %v2855_v55 = vld [vmem:[#allocation5 + $0x448] sm:$0xf0]  ;;  %v2730_v56 = vld [vmem:[#allocation5 + $0x60] sm:$0xf0]  ;;  %v2137_v57 = vld [vmem:[#allocation5 + $0x1b8] sm:$0xf]  ;;  %v2298_v59 = vor.u32 %v2815_v50, %v2297_v49 }
  0x3c   : > { %1522 = vmatpush.bf16.msra.mxu3 %v2498_v36  ;;  %v2775_v58 = vld [vmem:[#allocation5 + $0x1c8] sm:$0xf0]  ;;  %v2458_v60 = vor.u32 %v2855_v55, %v2457_v54  ;;  %v2277_v61 = vld [vmem:[#allocation5 + $0x2d0] sm:$0xf]  ;;  %v2810_v62 = vld [vmem:[#allocation5 + $0x2e0] sm:$0xf0]  ;;  %v1958_v63 = vor.u32 %v2730_v56, %v1957_v52 }
  0x3d   : > { %1484 = vmatpush.bf16.msra.mxu0 %v1998_v39  ;;  %1496 = vmatpush.bf16.msra.mxu1 %v2178_v41  ;;  %v1937_v0 = vld [vmem:[#allocation5 + $0x28] sm:$0xf]  ;;  %v2138_v1 = vor.u32 %v2775_v58, %v2137_v57  ;;  %v2437_v2 = vld [vmem:[#allocation5 + $0x410] sm:$0xf]  ;;  %v2850_v3 = vld [vmem:[#allocation5 + $0x420] sm:$0xf0]  ;;  %v2278_v7 = vor.u32 %v2810_v62, %v2277_v61 }
  0x3e   : > { %v2725_v4 = vld [vmem:[#allocation5 + $0x38] sm:$0xf0]  ;;  %v2117_v5 = vld [vmem:[#allocation5 + $0x190] sm:$0xf]  ;;  %v2770_v6 = vld [vmem:[#allocation5 + $0x1a0] sm:$0xf0]  ;;  %v2438_v8 = vor.u32 %v2850_v3, %v2437_v2 }
  0x3f   : > { %1510 = vmatpush.bf16.msra.mxu2 %v2318_v47  ;;  %v2257_v9 = vld [vmem:[#allocation5 + $0x2a8] sm:$0xf]  ;;  %v2805_v10 = vld [vmem:[#allocation5 + $0x2b8] sm:$0xf0]  ;;  %v1938_v11 = vor.u32 %v2725_v4, %v1937_v0  ;;  %v1917_v12 = vld [vmem:[#allocation5] sm:$0xf]  ;;  %v2118_v13 = vor.u32 %v2770_v6, %v2117_v5 }
  0x40   : > { %1523 = vmatpush.bf16.msra.mxu3 %v2478_v48  ;;  %v2417_v14 = vld [vmem:[#allocation5 + $0x3e8] sm:$0xf]  ;;  %v2845_v15 = vld [vmem:[#allocation5 + $0x3f8] sm:$0xf0]  ;;  %v2720_v16 = vld [vmem:[#allocation5 + $0x10] sm:$0xf0]  ;;  %v2258_v21 = vor.u32 %v2805_v10, %v2257_v9 }
  0x41   : > { %1485 = vmatpush.bf16.msra.mxu0 %v1978_v51  ;;  %1497 = vmatpush.bf16.msra.mxu1 %v2158_v53  ;;  %v2097_v17 = vld [vmem:[#allocation5 + $0x168] sm:$0xf]  ;;  %v2765_v18 = vld [vmem:[#allocation5 + $0x178] sm:$0xf0]  ;;  %v2697_v19 = vld [vmem:[#allocation5 + $0x618] sm:$0xf]  ;;  %v2418_v23 = vor.u32 %v2845_v15, %v2417_v14  ;;  %v1918_v27 = vor.u32 %v2720_v16, %v1917_v12 }
  0x42   : > { %v2915_v20 = vld [vmem:[#allocation5 + $0x628] sm:$0xf0]  ;;  %v2237_v22 = vld [vmem:[#allocation5 + $0x280] sm:$0xf]  ;;  %v2800_v24 = vld [vmem:[#allocation5 + $0x290] sm:$0xf0]  ;;  %v2098_v30 = vor.u32 %v2765_v18, %v2097_v17 }
  0x43   : > { %1511 = vmatpush.bf16.msra.mxu2 %v2298_v59  ;;  %v2793_v25 = vld [vmem:[#allocation5 + $0x25c] sm:$0xf]  ;;  %v2219_v26 = vld [vmem:[#allocation5 + $0x26c] sm:$0xf0]  ;;  %v2910_v29 = vld [vmem:[#allocation5 + $0x600] sm:$0xf0]  ;;  %v2698_v34 = vor.u32 %v2915_v20, %v2697_v19  ;;  %v2238_v38 = vor.u32 %v2800_v24, %v2237_v22 }
  0x44   : > { %1524 = vmatpush.bf16.msra.mxu3 %v2458_v60  ;;  %v2677_v28 = vld [vmem:[#allocation5 + $0x5f0] sm:$0xf]  ;;  %v2397_v31 = vld [vmem:[#allocation5 + $0x3c0] sm:$0xf]  ;;  %v2840_v32 = vld [vmem:[#allocation5 + $0x3d0] sm:$0xf0]  ;;  %v2222_v42 = vor.u32 %v2793_v25, %v2219_v26 }
  0x45   : > { %1486 = vmatpush.bf16.msra.mxu0 %v1958_v63  ;;  %1498 = vmatpush.bf16.msra.mxu1 %v2138_v1  ;;  %v2833_v33 = vld [vmem:[#allocation5 + $0x39c] sm:$0xf]  ;;  %v2379_v35 = vld [vmem:[#allocation5 + $0x3ac] sm:$0xf0]  ;;  %v2077_v36 = vld [vmem:[#allocation5 + $0x140] sm:$0xf]  ;;  %v2398_v43 = vor.u32 %v2840_v32, %v2397_v31  ;;  %v2678_v50 = vor.u32 %v2910_v29, %v2677_v28 }
  0x46   : > { %v2760_v37 = vld [vmem:[#allocation5 + $0x150] sm:$0xf0]  ;;  %v2753_v39 = vld [vmem:[#allocation5 + $0x11c] sm:$0xf]  ;;  %v2059_v40 = vld [vmem:[#allocation5 + $0x12c] sm:$0xf0]  ;;  %v2382_v46 = vor.u32 %v2833_v33, %v2379_v35 }
  0x47   : > { %1512 = vmatpush.bf16.msra.mxu2 %v2278_v7  ;;  %v180_v41 = vld [vmem:[%s3227_s7] sm:$0xff]  ;;  %v2657_v45 = vld [vmem:[#allocation5 + $0x5c8] sm:$0xf]  ;;  %v2078_v47 = vor.u32 %v2760_v37, %v2077_v36  ;;  %v2788_v48 = vld [vmem:[#allocation5 + $0x234] sm:$0xf]  ;;  %v2062_v52 = vor.u32 %v2753_v39, %v2059_v40  ;;  %s2922_s17 = smul.u32 40, %s3223_s29 }
  0x48   : > { %1525 = vmatpush.bf16.msra.mxu3 %v2438_v8  ;;  %v426_v44 = vunpack.c.l.b16 %v180_v41  ;;  %v2199_v49 = vld [vmem:[#allocation5 + $0x244] sm:$0xf0]  ;;  %v2905_v51 = vld [vmem:[#allocation5 + $0x5d8] sm:$0xf0]  ;;  %v2828_v53 = vld [vmem:[#allocation5 + $0x374] sm:$0xf]  ;;  %v427_v59 = vunpack.c.h.b16 %v180_v41 }
  0x49   : > { %1487 = vmatpush.bf16.msra.mxu0 %v1938_v11  ;;  %1499 = vmatpush.bf16.msra.mxu1 %v2118_v13  ;;  %v2359_v54 = vld [vmem:[#allocation5 + $0x384] sm:$0xf0]  ;;  %v2748_v55 = vld [vmem:[#allocation5 + $0xf4] sm:$0xf]  ;;  %v2202_v60 = vor.u32 %v2788_v48, %v2199_v49  ;;  %v2658_v63 = vor.u32 %v2905_v51, %v2657_v45  ;;  %v2783_v1 = vld [vmem:[#allocation5 + $0x20c] sm:$0xf] }
  0x4a   : > { %v2039_v56 = vld [vmem:[#allocation5 + $0x104] sm:$0xf0]  ;;  %v3238_v57 = vpack.c.b16 %v426_v44, %v426_v44  ;;  %v181_v58 = vld [vmem:[%s3227_s7 + $0x8] sm:$0xff]  ;;  %v2362_v0 = vor.u32 %v2828_v53, %v2359_v54  ;;  %v2823_v5 = vld [vmem:[#allocation5 + $0x34c] sm:$0xf]  ;;  %v3246_v12 = vpack.c.b16 %v427_v59, %v427_v59  ;;  %s3278_s27 = scalar_lea.vmem [#allocation7], %s2922_s17 }
  0x4b   : > { %1513 = vmatpush.bf16.msra.mxu2 %v2258_v21  ;;  %v428_v61 = vunpack.c.l.b16 %v181_v58  ;;  %v429_v62 = vunpack.c.h.b16 %v181_v58  ;;  %v2179_v2 = vld [vmem:[#allocation5 + $0x21c] sm:$0xf0]  ;;  %v2042_v4 = vor.u32 %v2748_v55, %v2039_v56  ;;  %v2900_v9 = vld [vmem:[#allocation5 + $0x5b0] sm:$0xf0]  ;;  %v2743_v10 = vld [vmem:[#allocation5 + $0xcc] sm:$0xf] }
  0x4c   : > { %1526 = vmatpush.bf16.msra.mxu3 %v2418_v23  ;;  %v2637_v3 = vld [vmem:[#allocation5 + $0x5a0] sm:$0xf]  ;;  %v2182_v13 = vor.u32 %v2783_v1, %v2179_v2  ;;  %v2778_v15 = vld [vmem:[#allocation5 + $0x1e4] sm:$0xf]  ;;  %v2159_v16 = vld [vmem:[#allocation5 + $0x1f4] sm:$0xf0] }
  0x4d   : > { %1488 = vmatpush.bf16.msra.mxu0 %v1918_v27  ;;  %1500 = vmatpush.bf16.msra.mxu1 %v2098_v30  ;;  %v2339_v6 = vld [vmem:[#allocation5 + $0x35c] sm:$0xf0]  ;;  %v3241_v7 = vpack.c.b16 %v428_v61, %v428_v61  ;;  %v3243_v8 = vpack.c.b16 %v429_v62, %v429_v62  ;;  %v2638_v17 = vor.u32 %v2900_v9, %v2637_v3  ;;  %v2617_v18 = vld [vmem:[#allocation5 + $0x578] sm:$0xf]  ;;  %v2818_v20 = vld [vmem:[#allocation5 + $0x324] sm:$0xf] }
  0x4e   : > { %v2019_v11 = vld [vmem:[#allocation5 + $0xdc] sm:$0xf0]  ;;  %v2342_v14 = vor.u32 %v2823_v5, %v2339_v6  ;;  %v2319_v21 = vld [vmem:[#allocation5 + $0x334] sm:$0xf0]  ;;  %v2895_v22 = vld [vmem:[#allocation5 + $0x588] sm:$0xf0]  ;;  %v2162_v25 = vor.u32 %v2778_v15, %v2159_v16 }
  0x4f   : > { %1514 = vmatpush.bf16.msra.mxu2 %v2238_v38  ;;  %v2022_v19 = vor.u32 %v2743_v10, %v2019_v11  ;;  %v2738_v23 = vld [vmem:[#allocation5 + $0xa4] sm:$0xf]  ;;  %v1999_v24 = vld [vmem:[#allocation5 + $0xb4] sm:$0xf0]  ;;  %v2322_v26 = vor.u32 %v2818_v20, %v2319_v21  ;;  %v2773_v27 = vld [vmem:[#allocation5 + $0x1bc] sm:$0xf]  ;;  %v2618_v29 = vor.u32 %v2895_v22, %v2617_v18 }
  0x50   : > { %1527 = vmatpush.bf16.msra.mxu3 %v2398_v43  ;;  %1489 = vmatmul.bf16.vlgmr.msra.gmra.mxu0 %v3238_v57  ;;  %v2139_v28 = vld [vmem:[#allocation5 + $0x1cc] sm:$0xf0]  ;;  %v2002_v31 = vor.u32 %v2738_v23, %v1999_v24  ;;  %v2813_v32 = vld [vmem:[#allocation5 + $0x2fc] sm:$0xf]  ;;  %v2768_v39 = vld [vmem:[#allocation5 + $0x194] sm:$0xf] }
  0x51   : > { %1533 = vmatpush.bf16.msrb.mxu0 %v2698_v34  ;;  %1501 = vmatpush.bf16.msra.mxu1 %v2078_v47  ;;  %v2597_v30 = vld [vmem:[#allocation5 + $0x550] sm:$0xf]  ;;  %v2890_v34 = vld [vmem:[#allocation5 + $0x560] sm:$0xf0]  ;;  %v2733_v35 = vld [vmem:[#allocation5 + $0x7c] sm:$0xf]  ;;  %v2142_v37 = vor.u32 %v2773_v27, %v2139_v28 }
  0x52   : > { %1515 = vmatmul.bf16.vlgmr.msra.gmra.mxu2 %v3241_v7  ;;  %v2299_v33 = vld [vmem:[#allocation5 + $0x30c] sm:$0xf0]  ;;  %v2119_v40 = vld [vmem:[#allocation5 + $0x1a4] sm:$0xf0]  ;;  %v2598_v41 = vor.u32 %v2890_v34, %v2597_v30  ;;  %v2808_v44 = vld [vmem:[#allocation5 + $0x2d4] sm:$0xf] }
  0x53   : > { %1559 = vmatpush.bf16.msrb.mxu2 %v2222_v42  ;;  %1528 = vmatmul.bf16.vlgmr.msra.gmra.mxu3 %v3243_v8  ;;  %v1979_v36 = vld [vmem:[#allocation5 + $0x8c] sm:$0xf0]  ;;  %v2302_v38 = vor.u32 %v2813_v32, %v2299_v33  ;;  %v2577_v42 = vld [vmem:[#allocation5 + $0x528] sm:$0xf]  ;;  %v2728_v47 = vld [vmem:[#allocation5 + $0x54] sm:$0xf]  ;;  %v2122_v49 = vor.u32 %v2768_v39, %v2119_v40 }
  0x54   : > { %1572 = vmatpush.bf16.msrb.mxu3 %v2382_v46  ;;  %1502 = vmatmul.bf16.vlgmr.msra.gmra.mxu1 %v3246_v12  ;;  %v1982_v43 = vor.u32 %v2733_v35, %v1979_v36  ;;  %v2279_v45 = vld [vmem:[#allocation5 + $0x2e4] sm:$0xf0]  ;;  %v2885_v46 = vld [vmem:[#allocation5 + $0x538] sm:$0xf0]  ;;  %v2099_v53 = vld [vmem:[#allocation5 + $0x17c] sm:$0xf0] }
  0x55   : > { %1534 = vmatpush.bf16.msrb.mxu0 %v2678_v50  ;;  %1546 = vmatpush.bf16.msrb.mxu1 %v2062_v52  ;;  %v1959_v48 = vld [vmem:[#allocation5 + $0x64] sm:$0xf0]  ;;  %v2557_v50 = vld [vmem:[#allocation5 + $0x500] sm:$0xf]  ;;  %v2282_v51 = vor.u32 %v2808_v44, %v2279_v45  ;;  %v2763_v52 = vld [vmem:[#allocation5 + $0x16c] sm:$0xf]  ;;  %v2578_v54 = vor.u32 %v2885_v46, %v2577_v42 }
  0x56   : > { %v1962_v55 = vor.u32 %v2728_v47, %v1959_v48  ;;  %v182_v56 = vld [vmem:[%s3227_s7 + $0x10] sm:$0xf]  ;;  %v2803_v58 = vld [vmem:[#allocation5 + $0x2ac] sm:$0xf]  ;;  %v2259_v59 = vld [vmem:[#allocation5 + $0x2bc] sm:$0xf0]  ;;  %v2102_v1 = vor.u32 %v2763_v52, %v2099_v53 }
  0x57   : > { %1560 = vmatpush.bf16.msrb.mxu2 %v2202_v60  ;;  %v2880_v60 = vld [vmem:[#allocation5 + $0x510] sm:$0xf0]  ;;  %v2723_v61 = vld [vmem:[#allocation5 + $0x2c] sm:$0xf]  ;;  %v1939_v62 = vld [vmem:[#allocation5 + $0x3c] sm:$0xf0]  ;;  %v430_v2 = vunpack.c.l.b16 %v182_v56  ;;  %v2262_v3 = vor.u32 %v2803_v58, %v2259_v59 }
  0x58   : > { %1573 = vmatpush.bf16.msrb.mxu3 %v2362_v0  ;;  %v2539_v0 = vld [vmem:[#allocation5 + $0x4ec] sm:$0xf0]  ;;  %v2079_v5 = vld [vmem:[#allocation5 + $0x154] sm:$0xf0]  ;;  %v2558_v6 = vor.u32 %v2880_v60, %v2557_v50  ;;  %v2868_v9 = vld [vmem:[#allocation5 + $0x4b4] sm:$0xf]  ;;  %v1942_v10 = vor.u32 %v2723_v61, %v1939_v62 }
  0x59   : > { %1535 = vmatpush.bf16.msrb.mxu0 %v2658_v63  ;;  %1547 = vmatpush.bf16.msrb.mxu1 %v2042_v4  ;;  %v2873_v63 = vld [vmem:[#allocation5 + $0x4dc] sm:$0xf]  ;;  %v2758_v4 = vld [vmem:[#allocation5 + $0x144] sm:$0xf]  ;;  %v2065_v11 = vld [vmem:[#allocation5 + $0x120] sm:$0xf]  ;;  %v3252_v23 = vpack.c.b16 %v430_v2, %v430_v2 }
  0x5a   : > { %v2542_v15 = vor.u32 %v2873_v63, %v2539_v0  ;;  %v2239_v16 = vld [vmem:[#allocation5 + $0x294] sm:$0xf0]  ;;  %v2082_v20 = vor.u32 %v2758_v4, %v2079_v5  ;;  %v2225_v21 = vld [vmem:[#allocation5 + $0x260] sm:$0xf]  ;;  %v2796_v22 = vld [vmem:[#allocation5 + $0x270] sm:$0xf0] }
  0x5b   : > { %1561 = vmatpush.bf16.msrb.mxu2 %v2182_v13  ;;  %v2756_v13 = vld [vmem:[#allocation5 + $0x130] sm:$0xf0]  ;;  %v1919_v18 = vld [vmem:[#allocation5 + $0x14] sm:$0xf0]  ;;  %v2751_v30 = vld [vmem:[#allocation5 + $0x108] sm:$0xf0]  ;;  %v2226_v33 = vor.u32 %v2796_v22, %v2225_v21 }
  0x5c   : > { %1574 = vmatpush.bf16.msrb.mxu3 %v2342_v14  ;;  %v2798_v14 = vld [vmem:[#allocation5 + $0x284] sm:$0xf]  ;;  %v2066_v24 = vor.u32 %v2756_v13, %v2065_v11  ;;  %v2863_v32 = vld [vmem:[#allocation5 + $0x48c] sm:$0xf]  ;;  %v2499_v34 = vld [vmem:[#allocation5 + $0x49c] sm:$0xf0] }
  0x5d   : > { %1536 = vmatpush.bf16.msrb.mxu0 %v2638_v17  ;;  %1548 = vmatpush.bf16.msrb.mxu1 %v2022_v19  ;;  %v2718_v17 = vld [vmem:[#allocation5 + $0x4] sm:$0xf]  ;;  %v2519_v19 = vld [vmem:[#allocation5 + $0x4c4] sm:$0xf0]  ;;  %v2242_v27 = vor.u32 %v2798_v14, %v2239_v16  ;;  %v2205_v36 = vld [vmem:[#allocation5 + $0x238] sm:$0xf] }
  0x5e   : > { %v1922_v28 = vor.u32 %v2718_v17, %v1919_v18  ;;  %v2908_v39 = vld [vmem:[#allocation5 + $0x5f4] sm:$0xf]  ;;  %v2679_v40 = vld [vmem:[#allocation5 + $0x604] sm:$0xf0]  ;;  %v2746_v42 = vld [vmem:[#allocation5 + $0xe0] sm:$0xf0] }
  0x5f   : > { %1562 = vmatpush.bf16.msrb.mxu2 %v2162_v25  ;;  %v2913_v25 = vld [vmem:[#allocation5 + $0x61c] sm:$0xf]  ;;  %v2858_v44 = vld [vmem:[#allocation5 + $0x464] sm:$0xf]  ;;  %v2479_v46 = vld [vmem:[#allocation5 + $0x474] sm:$0xf0]  ;;  %v2682_v47 = vor.u32 %v2908_v39, %v2679_v40 }
  0x60   : > { %1575 = vmatpush.bf16.msrb.mxu3 %v2322_v26  ;;  %v2699_v26 = vld [vmem:[#allocation5 + $0x62c] sm:$0xf0]  ;;  %v2659_v52 = vld [vmem:[#allocation5 + $0x5dc] sm:$0xf0]  ;;  %v2005_v53 = vld [vmem:[#allocation5 + $0xa8] sm:$0xf] }
  0x61   : > { %1537 = vmatpush.bf16.msrb.mxu0 %v2618_v29  ;;  %1549 = vmatpush.bf16.msrb.mxu1 %v2002_v31  ;;  %v2045_v29 = vld [vmem:[#allocation5 + $0xf8] sm:$0xf]  ;;  %v2522_v31 = vor.u32 %v2868_v9, %v2519_v19  ;;  %v2702_v35 = vor.u32 %v2913_v25, %v2699_v26  ;;  %v2185_v48 = vld [vmem:[#allocation5 + $0x210] sm:$0xf]  ;;  %v2853_v56 = vld [vmem:[#allocation5 + $0x43c] sm:$0xf] }
  0x62   : > { %v2459_v59 = vld [vmem:[#allocation5 + $0x44c] sm:$0xf0]  ;;  %v2165_v61 = vld [vmem:[#allocation5 + $0x1e8] sm:$0xf]  ;;  %v2781_v62 = vld [vmem:[#allocation5 + $0x1f8] sm:$0xf0] }
  0x63   : > { %1563 = vmatpush.bf16.msrb.mxu2 %v2142_v37  ;;  %v2791_v37 = vld [vmem:[#allocation5 + $0x248] sm:$0xf0]  ;;  %v2898_v0 = vld [vmem:[#allocation5 + $0x5a4] sm:$0xf]  ;;  %v1985_v2 = vld [vmem:[#allocation5 + $0x80] sm:$0xf]  ;;  %v2462_v4 = vor.u32 %v2853_v56, %v2459_v59 }
  0x64   : > { %1576 = vmatpush.bf16.msrb.mxu3 %v2302_v38  ;;  %v2046_v38 = vor.u32 %v2751_v30, %v2045_v29  ;;  %v2206_v45 = vor.u32 %v2791_v37, %v2205_v36  ;;  %v2848_v5 = vld [vmem:[#allocation5 + $0x414] sm:$0xf]  ;;  %v2439_v9 = vld [vmem:[#allocation5 + $0x424] sm:$0xf0]  ;;  %v2145_v11 = vld [vmem:[#allocation5 + $0x1c0] sm:$0xf] }
  0x65   : > { %1538 = vmatpush.bf16.msrb.mxu0 %v2598_v41  ;;  %1550 = vmatpush.bf16.msrb.mxu1 %v1982_v43  ;;  %v2025_v41 = vld [vmem:[#allocation5 + $0xd0] sm:$0xf]  ;;  %v2502_v43 = vor.u32 %v2863_v32, %v2499_v34  ;;  %v2776_v13 = vld [vmem:[#allocation5 + $0x1d0] sm:$0xf0]  ;;  %v1965_v17 = vld [vmem:[#allocation5 + $0x58] sm:$0xf]  ;;  %v2442_v19 = vor.u32 %v2848_v5, %v2439_v9 }
  0x66   : > { %v2026_v50 = vor.u32 %v2746_v42, %v2025_v41  ;;  %v2619_v16 = vld [vmem:[#allocation5 + $0x58c] sm:$0xf0]  ;;  %v2731_v18 = vld [vmem:[#allocation5 + $0x68] sm:$0xf0]  ;;  %v2146_v21 = vor.u32 %v2776_v13, %v2145_v11  ;;  %v2419_v22 = vld [vmem:[#allocation5 + $0x3fc] sm:$0xf0] }
  0x67   : > { %1564 = vmatpush.bf16.msrb.mxu2 %v2122_v49  ;;  %v2786_v49 = vld [vmem:[#allocation5 + $0x220] sm:$0xf0]  ;;  %v2125_v25 = vld [vmem:[#allocation5 + $0x198] sm:$0xf]  ;;  %v2771_v26 = vld [vmem:[#allocation5 + $0x1a8] sm:$0xf0] }
  0x68   : > { %1577 = vmatpush.bf16.msrb.mxu3 %v2282_v51  ;;  %v2903_v51 = vld [vmem:[#allocation5 + $0x5cc] sm:$0xf]  ;;  %v2186_v58 = vor.u32 %v2786_v49, %v2185_v48  ;;  %v2599_v29 = vld [vmem:[#allocation5 + $0x564] sm:$0xf0]  ;;  %v1945_v30 = vld [vmem:[#allocation5 + $0x30] sm:$0xf] }
  0x69   : > { %1539 = vmatpush.bf16.msrb.mxu0 %v2578_v54  ;;  %1551 = vmatpush.bf16.msrb.mxu1 %v1962_v55  ;;  %v2741_v54 = vld [vmem:[#allocation5 + $0xb8] sm:$0xf0]  ;;  %v2482_v55 = vor.u32 %v2858_v44, %v2479_v46  ;;  %v2662_v60 = vor.u32 %v2903_v51, %v2659_v52  ;;  %v2399_v34 = vld [vmem:[#allocation5 + $0x3d4] sm:$0xf0]  ;;  %v2385_v36 = vld [vmem:[#allocation5 + $0x3a0] sm:$0xf] }
  0x6a   : > { %v2006_v63 = vor.u32 %v2741_v54, %v2005_v53  ;;  %v2766_v39 = vld [vmem:[#allocation5 + $0x180] sm:$0xf0]  ;;  %v2836_v40 = vld [vmem:[#allocation5 + $0x3b0] sm:$0xf0]  ;;  %v2883_v42 = vld [vmem:[#allocation5 + $0x52c] sm:$0xf] }
  0x6b   : > { %1565 = vmatpush.bf16.msrb.mxu2 %v2102_v1  ;;  %v2639_v1 = vld [vmem:[#allocation5 + $0x5b4] sm:$0xf0]  ;;  %v1925_v44 = vld [vmem:[#allocation5 + $0x8] sm:$0xf]  ;;  %v2705_v48 = vld [vmem:[#allocation5 + $0x620] sm:$0xf] }
  0x6c   : > { %1578 = vmatpush.bf16.msrb.mxu3 %v2262_v3  ;;  %v2736_v3 = vld [vmem:[#allocation5 + $0x90] sm:$0xf0]  ;;  %v2365_v51 = vld [vmem:[#allocation5 + $0x378] sm:$0xf]  ;;  %v2085_v53 = vld [vmem:[#allocation5 + $0x148] sm:$0xf] }
  0x6d   : > { %1540 = vmatpush.bf16.msrb.mxu0 %v2558_v6  ;;  %1552 = vmatpush.bf16.msrb.mxu1 %v1942_v10  ;;  %v2166_v6 = vor.u32 %v2781_v62, %v2165_v61  ;;  %v2642_v10 = vor.u32 %v2898_v0, %v2639_v1  ;;  %v1986_v14 = vor.u32 %v2736_v3, %v1985_v2  ;;  %v2916_v49 = vld [vmem:[#allocation5 + $0x630] sm:$0xf0]  ;;  %v2761_v54 = vld [vmem:[#allocation5 + $0x158] sm:$0xf0]  ;;  %v2067_v59 = vld [vmem:[#allocation5 + $0x134] sm:$0xf0] }
  0x6e   : > { %v2878_v61 = vld [vmem:[#allocation5 + $0x504] sm:$0xf]  ;;  %v2559_v62 = vld [vmem:[#allocation5 + $0x514] sm:$0xf0]  ;;  %v2086_v0 = vor.u32 %v2761_v54, %v2085_v53  ;;  %v2876_v1 = vld [vmem:[#allocation5 + $0x4f0] sm:$0xf0] }
  0x6f   : > { %1566 = vmatpush.bf16.msrb.mxu2 %v2082_v20  ;;  %v2843_v20 = vld [vmem:[#allocation5 + $0x3ec] sm:$0xf]  ;;  %v2685_v2 = vld [vmem:[#allocation5 + $0x5f8] sm:$0xf]  ;;  %v2345_v5 = vld [vmem:[#allocation5 + $0x350] sm:$0xf] }
  0x70   : > { %1541 = vmatmul.bf16.vlgmr.msrb.gmra.mxu0 %v3252_v23  ;;  %1579 = vmatpush.bf16.msrb.mxu3 %v2242_v27  ;;  %v1966_v27 = vor.u32 %v2731_v18, %v1965_v17  ;;  %v2422_v32 = vor.u32 %v2843_v20, %v2419_v22  ;;  %v2911_v3 = vld [vmem:[#allocation5 + $0x608] sm:$0xf0]  ;;  %v2826_v9 = vld [vmem:[#allocation5 + $0x360] sm:$0xf0]  ;;  %v2749_v11 = vld [vmem:[#allocation5 + $0xfc] sm:$0xf] }
  0x71   : > { %1585 = vmatpush.bf16.msra.mxu0 %v2542_v15  ;;  %1553 = vmatpush.bf16.msrb.mxu1 %v1922_v28  ;;  %v2893_v15 = vld [vmem:[#allocation5 + $0x57c] sm:$0xf]  ;;  %v2888_v28 = vld [vmem:[#allocation5 + $0x554] sm:$0xf]  ;;  %v2047_v13 = vld [vmem:[#allocation5 + $0x10c] sm:$0xf0]  ;;  %v2346_v20 = vor.u32 %v2826_v9, %v2345_v5 }
  0x72   : > { %1567 = vmatmul.bf16.vlgmr.msrb.gmra.mxu2 %v3246_v12  ;;  %v2602_v37 = vor.u32 %v2888_v28, %v2599_v29  ;;  %v2871_v17 = vld [vmem:[#allocation5 + $0x4c8] sm:$0xf0]  ;;  %v2665_v18 = vld [vmem:[#allocation5 + $0x5d0] sm:$0xf]  ;;  %v2050_v22 = vor.u32 %v2749_v11, %v2047_v13  ;;  %v2465_v53 = vld [vmem:[#allocation5 + $0x440] sm:$0xf] }
  0x73   : > { %1611 = vmatpush.bf16.msra.mxu2 %v2066_v24  ;;  %1580 = vmatmul.bf16.vlgmr.msrb.gmra.mxu3 %v3241_v7  ;;  %v2622_v24 = vor.u32 %v2893_v15, %v2619_v16  ;;  %v2686_v15 = vor.u32 %v2911_v3, %v2685_v2  ;;  %v2525_v16 = vld [vmem:[#allocation5 + $0x4b8] sm:$0xf]  ;;  %v2505_v29 = vld [vmem:[#allocation5 + $0x490] sm:$0xf]  ;;  %v2856_v54 = vld [vmem:[#allocation5 + $0x450] sm:$0xf0] }
  0x74   : > { %1624 = vmatpush.bf16.msra.mxu3 %v2226_v33  ;;  %1554 = vmatmul.bf16.vlgmr.msrb.gmra.mxu1 %v3238_v57  ;;  %v2838_v33 = vld [vmem:[#allocation5 + $0x3c4] sm:$0xf]  ;;  %v2445_v2 = vld [vmem:[#allocation5 + $0x418] sm:$0xf]  ;;  %v2851_v3 = vld [vmem:[#allocation5 + $0x428] sm:$0xf0] }
  0x75   : > { %1586 = vmatpush.bf16.msra.mxu0 %v2522_v31  ;;  %1598 = vmatpush.bf16.msra.mxu1 %v2702_v35  ;;  %v2726_v31 = vld [vmem:[#allocation5 + $0x40] sm:$0xf0]  ;;  %v2126_v35 = vor.u32 %v2771_v26, %v2125_v25  ;;  %v2402_v46 = vor.u32 %v2838_v33, %v2399_v34  ;;  %v2744_v25 = vld [vmem:[#allocation5 + $0xd4] sm:$0xf]  ;;  %v2027_v26 = vld [vmem:[#allocation5 + $0xe4] sm:$0xf0] }
  0x76   : > { %v1946_v41 = vor.u32 %v2726_v31, %v1945_v30  ;;  %v2866_v30 = vld [vmem:[#allocation5 + $0x4a0] sm:$0xf0]  ;;  %v2645_v31 = vld [vmem:[#allocation5 + $0x5a8] sm:$0xf]  ;;  %v2305_v34 = vld [vmem:[#allocation5 + $0x300] sm:$0xf] }
  0x77   : > { %1612 = vmatpush.bf16.msra.mxu2 %v2046_v38  ;;  %v2105_v38 = vld [vmem:[#allocation5 + $0x170] sm:$0xf]  ;;  %v2886_v5 = vld [vmem:[#allocation5 + $0x540] sm:$0xf0]  ;;  %v2245_v9 = vld [vmem:[#allocation5 + $0x288] sm:$0xf] }
  0x78   : > { %1625 = vmatpush.bf16.msra.mxu3 %v2206_v45  ;;  %v2721_v45 = vld [vmem:[#allocation5 + $0x18] sm:$0xf0]  ;;  %v2724_v13 = vld [vmem:[#allocation5 + $0x34] sm:$0xf]  ;;  %s2918_s4 = smul.u32 40, %s3156_s16  ;;  %s1825_s15 = sshll.u32 %s3278_s27, 4  ;;  %s1826_s15 = int_to_ptr.vmem [resolvable:$true] %s1825_s15 }
  0x79   : > { %1587 = vmatpush.bf16.msra.mxu0 %v2502_v43  ;;  %1599 = vmatpush.bf16.msra.mxu1 %v2682_v47  ;;  %v2579_v43 = vld [vmem:[#allocation5 + $0x53c] sm:$0xf0]  ;;  %v2106_v47 = vor.u32 %v2766_v39, %v2105_v38  ;;  %v1926_v56 = vor.u32 %v2721_v45, %v1925_v44  ;;  %v2506_v39 = vor.u32 %v2866_v30, %v2505_v29  ;;  %v2896_v44 = vld [vmem:[#allocation5 + $0x590] sm:$0xf0]  ;;  %v2801_v11 = vld [vmem:[#allocation5 + $0x298] sm:$0xf0] }
  0x7a   : > { %v2582_v52 = vor.u32 %v2883_v42, %v2579_v43  ;;  %v2007_v38 = vld [vmem:[#allocation5 + $0xbc] sm:$0xf0]  ;;  %v2861_v42 = vld [vmem:[#allocation5 + $0x478] sm:$0xf0]  ;;  %v2719_v30 = vld [vmem:[#allocation5 + $0xc] sm:$0xf]  ;;  %s1823_s14 = scalar_lea.hbm %s3322_s2, %s2918_s4 }
  0x7b   : > { %1613 = vmatpush.bf16.msra.mxu2 %v2026_v50  ;;  %v2386_v50 = vor.u32 %v2836_v40, %v2385_v36  ;;  %v2816_v36 = vld [vmem:[#allocation5 + $0x310] sm:$0xf0]  ;;  %v2625_v43 = vld [vmem:[#allocation5 + $0x580] sm:$0xf]  ;;  %v2789_v29 = vld [vmem:[#allocation5 + $0x23c] sm:$0xf] }
  0x7c   : > { %1626 = vmatpush.bf16.msra.mxu3 %v2186_v58  ;;  %v2754_v58 = vld [vmem:[#allocation5 + $0x124] sm:$0xf]  ;;  %v2306_v45 = vor.u32 %v2816_v36, %v2305_v34  ;;  %v2707_v36 = vld [vmem:[#allocation5 + $0x634] sm:$0xf0]  ;;  %s1827_s18 = sshll.u32 %s1823_s14, 4  ;;  %s1812_s19 = scalar_lea.sflag [#allocation4], %s3223_s29  ;;  %s1828_s18 = int_to_ptr.hbm [resolvable:$true] %s1827_s18 }
  0x7d   : > { %1588 = vmatpush.bf16.msra.mxu0 %v2482_v55  ;;  %1600 = vmatpush.bf16.msra.mxu1 %v2662_v60  ;;  %v2831_v55 = vld [vmem:[#allocation5 + $0x388] sm:$0xf0]  ;;  %v2706_v60 = vor.u32 %v2916_v49, %v2705_v48  ;;  %v2734_v49 = vld [vmem:[#allocation5 + $0x84] sm:$0xf]  ;;  %s3056_s20 = sshra.s32 %s1828_s18, 4  ;;  %s3062_s24 = scalar_lea.hbm %s3322_s2, 80  ;;  %s3057_s20 = int_to_ptr.hbm [resolvable:$true] %s3056_s20 }
  0x7e   : > { %v2811_v48 = vld [vmem:[#allocation5 + $0x2e8] sm:$0xf0]  ;;  %s3058_s21 = scalar_lea.hbm %s3057_s20, 40  ;;  %p3063_p13 = scmp.lt.s32.totalorder %s3057_s20, %s3322_s2 }
  0x7f   : > { %1614 = vmatpush.bf16.msra.mxu2 %v2006_v63  ;;  %v2545_v63 = vld [vmem:[#allocation5 + $0x4e0] sm:$0xf]  ;;  %p3059_p1 = scmp.ne.s32.totalorder %s3057_s20, %s3058_s21  ;;  %p3064_p8 = scmp.lt.s32.totalorder %s3062_s24, %s3058_s21 }
  0x80   : > { %1627 = vmatpush.bf16.msra.mxu3 %v2166_v6  ;;  %v2070_v6 = vor.u32 %v2754_v58, %v2067_v59  ;;  %v2265_v59 = vld [vmem:[#allocation5 + $0x2b0] sm:$0xf] }
  0x81   : > { %1589 = vmatpush.bf16.msra.mxu0 %v2462_v4  ;;  %1601 = vmatpush.bf16.msra.mxu1 %v2642_v10  ;;  %v2366_v4 = vor.u32 %v2831_v55, %v2365_v51  ;;  %v2562_v10 = vor.u32 %v2878_v61, %v2559_v62  ;;  %v2605_v55 = vld [vmem:[#allocation5 + $0x558] sm:$0xf]  ;;  %v2806_v61 = vld [vmem:[#allocation5 + $0x2c0] sm:$0xf0]  ;;  %v2729_v62 = vld [vmem:[#allocation5 + $0x5c] sm:$0xf]  ;;  %p3060_p3 = pnand %p3059_p1, %p3192_p0  ;;  %p3065_p7 = por %p3064_p8, %p3063_p13 }
  0x83   : > { %1615 = vmatpush.bf16.msra.mxu2 %v1986_v14  ;;  %v2546_v14 = vor.u32 %v2876_v1, %v2545_v63  ;;  %v1967_v63 = vld [vmem:[#allocation5 + $0x6c] sm:$0xf0]  ;;  %p3061_p5 = pneg %p3060_p3 }
  0x84   : > { %1628 = vmatpush.bf16.msra.mxu3 %v2146_v21  ;;  %v2325_v21 = vld [vmem:[#allocation5 + $0x328] sm:$0xf] }
  0x85   : > { %1590 = vmatpush.bf16.msra.mxu0 %v2442_v19  ;;  %1602 = vmatpush.bf16.msra.mxu1 %v2622_v24  ;;  %v2906_v19 = vld [vmem:[#allocation5 + $0x5e0] sm:$0xf0]  ;;  %v2821_v24 = vld [vmem:[#allocation5 + $0x338] sm:$0xf0]  ;;  %p3066_p9 = pnand %p3065_p7, %p3061_p5 }
  0x86   : > { %v2666_v28 = vor.u32 %v2906_v19, %v2665_v18  ;;  %v2326_v33 = vor.u32 %v2821_v24, %v2325_v21  ;;  %v2425_v19 = vld [vmem:[#allocation5 + $0x3f0] sm:$0xf]  ;;  %v2565_v21 = vld [vmem:[#allocation5 + $0x508] sm:$0xf]  ;;  %v2246_v24 = vor.u32 %v2801_v11, %v2245_v9 }
  0x87   : > { %1616 = vmatpush.bf16.msra.mxu2 %v1966_v27  ;;  %v2526_v27 = vor.u32 %v2871_v17, %v2525_v16  ;;  %v2227_v16 = vld [vmem:[#allocation5 + $0x274] sm:$0xf0]  ;;  %v2446_v17 = vor.u32 %v2851_v3, %v2445_v2  ;;  %v2824_v3 = vld [vmem:[#allocation5 + $0x354] sm:$0xf] }
  0x88   : > { %1629 = vmatpush.bf16.msra.mxu3 %v2126_v35  ;;  %v2030_v35 = vor.u32 %v2744_v25, %v2027_v26  ;;  %v2874_v26 = vld [vmem:[#allocation5 + $0x4e4] sm:$0xf] }
  0x89   : > { %1591 = vmatpush.bf16.msra.mxu0 %v2422_v32  ;;  %1603 = vmatpush.bf16.msra.mxu1 %v2602_v37  ;;  %v2901_v32 = vld [vmem:[#allocation5 + $0x5b8] sm:$0xf0]  ;;  %v2739_v37 = vld [vmem:[#allocation5 + $0xac] sm:$0xf] }
  0x8a   : > { %v2646_v40 = vor.u32 %v2901_v32, %v2645_v31  ;;  %v1927_v31 = vld [vmem:[#allocation5 + $0x1c] sm:$0xf0]  ;;  %v2207_v32 = vld [vmem:[#allocation5 + $0x24c] sm:$0xf0] }
  0x8b   : > { %1617 = vmatpush.bf16.msra.mxu2 %v1946_v41  ;;  %v2485_v41 = vld [vmem:[#allocation5 + $0x468] sm:$0xf] }
  0x8c   : > { %1630 = vmatpush.bf16.msra.mxu3 %v2106_v47  ;;  %v2010_v47 = vor.u32 %v2739_v37, %v2007_v38  ;;  %v2486_v51 = vor.u32 %v2861_v42, %v2485_v41  ;;  %v2405_v38 = vld [vmem:[#allocation5 + $0x3c8] sm:$0xf]  ;;  %v1930_v41 = vor.u32 %v2719_v30, %v1927_v31  ;;  %v2387_v42 = vld [vmem:[#allocation5 + $0x3b4] sm:$0xf0]  ;;  %v2814_v31 = vld [vmem:[#allocation5 + $0x304] sm:$0xf] }
  0x8d   : > { %1592 = vmatpush.bf16.msra.mxu0 %v2402_v46  ;;  %1604 = vmatpush.bf16.msra.mxu1 %v2582_v52  ;;  %v2285_v46 = vld [vmem:[#allocation5 + $0x2d8] sm:$0xf]  ;;  %v2626_v52 = vor.u32 %v2896_v44, %v2625_v43  ;;  %v2869_v43 = vld [vmem:[#allocation5 + $0x4bc] sm:$0xf]  ;;  %v2527_v44 = vld [vmem:[#allocation5 + $0x4cc] sm:$0xf0] }
  0x8e   : > { %v2286_v58 = vor.u32 %v2811_v48, %v2285_v46  ;;  %v2784_v46 = vld [vmem:[#allocation5 + $0x214] sm:$0xf]  ;;  %v2187_v48 = vld [vmem:[#allocation5 + $0x224] sm:$0xf0] }
  0x8f   : > { %1618 = vmatpush.bf16.msra.mxu2 %v1926_v56  ;;  %v2891_v56 = vld [vmem:[#allocation5 + $0x568] sm:$0xf0] }
  0x90   : > { %1593 = vmatmul.bf16.vlgmr.msra.gmra.mxu0 %v3243_v8  ;;  %1631 = vmatpush.bf16.msra.mxu3 %v2086_v0  ;;  %v2466_v0 = vor.u32 %v2856_v54, %v2465_v53  ;;  %v2606_v1 = vor.u32 %v2891_v56, %v2605_v55  ;;  %v2530_v53 = vor.u32 %v2869_v43, %v2527_v44  ;;  %v2829_v54 = vld [vmem:[#allocation5 + $0x37c] sm:$0xf]  ;;  %v2367_v55 = vld [vmem:[#allocation5 + $0x38c] sm:$0xf0]  ;;  %v2864_v56 = vld [vmem:[#allocation5 + $0x494] sm:$0xf] }
  0x91   : > { %1637 = vmatpush.bf16.msrb.mxu0 %v2386_v50  ;;  %1605 = vmatpush.bf16.msra.mxu1 %v2562_v10  ;;  %v1987_v50 = vld [vmem:[#allocation5 + $0x94] sm:$0xf0]  ;;  %v1970_v10 = vor.u32 %v2729_v62, %v1967_v63  ;;  %v2167_v62 = vld [vmem:[#allocation5 + $0x1fc] sm:$0xf0]  ;;  %v2904_v63 = vld [vmem:[#allocation5 + $0x5d4] sm:$0xf] }
  0x92   : > { %1619 = vmatmul.bf16.vlgmr.msra.gmra.mxu2 %v3238_v57  ;;  %v2809_v43 = vld [vmem:[#allocation5 + $0x2dc] sm:$0xf]  ;;  %v2287_v44 = vld [vmem:[#allocation5 + $0x2ec] sm:$0xf0] }
  0x93   : > { %1663 = vmatpush.bf16.msrb.mxu2 %v2706_v60  ;;  %1632 = vmatmul.bf16.vlgmr.msra.gmra.mxu3 %v3246_v12  ;;  %v1990_v60 = vor.u32 %v2734_v49, %v1987_v50  ;;  %v2909_v50 = vld [vmem:[#allocation5 + $0x5fc] sm:$0xf] }
  0x94   : > { %1676 = vmatpush.bf16.msrb.mxu3 %v2070_v6  ;;  %1606 = vmatmul.bf16.vlgmr.msra.gmra.mxu1 %v3252_v23  ;;  %v2266_v6 = vor.u32 %v2806_v61, %v2265_v59  ;;  %v2190_v59 = vor.u32 %v2784_v46, %v2187_v48  ;;  %v2427_v46 = vld [vmem:[#allocation5 + $0x404] sm:$0xf0]  ;;  %v2759_v48 = vld [vmem:[#allocation5 + $0x14c] sm:$0xf] }
  0x95   : > { %1638 = vmatpush.bf16.msrb.mxu0 %v2366_v4  ;;  %1650 = vmatpush.bf16.msrb.mxu1 %v2546_v14  ;;  %v2585_v4 = vld [vmem:[#allocation5 + $0x530] sm:$0xf]  ;;  %v1947_v14 = vld [vmem:[#allocation5 + $0x44] sm:$0xf0] }
  0x96   : > { %v2586_v18 = vor.u32 %v2886_v5, %v2585_v4  ;;  %v1950_v25 = vor.u32 %v2724_v13, %v1947_v14  ;;  %v2347_v4 = vld [vmem:[#allocation5 + $0x364] sm:$0xf0]  ;;  %v2859_v5 = vld [vmem:[#allocation5 + $0x46c] sm:$0xf]  ;;  %v2147_v13 = vld [vmem:[#allocation5 + $0x1d4] sm:$0xf0] }
  0x97   : > { %1664 = vmatpush.bf16.msrb.mxu2 %v2686_v15  ;;  %v2794_v15 = vld [vmem:[#allocation5 + $0x264] sm:$0xf]  ;;  %v2899_v14 = vld [vmem:[#allocation5 + $0x5ac] sm:$0xf] }
  0x98   : > { %1677 = vmatpush.bf16.msrb.mxu3 %v2050_v22  ;;  %v2881_v22 = vld [vmem:[#allocation5 + $0x518] sm:$0xf0] }
  0x99   : > { %1639 = vmatpush.bf16.msrb.mxu0 %v2346_v20  ;;  %1651 = vmatpush.bf16.msrb.mxu1 %v2526_v27  ;;  %v2846_v20 = vld [vmem:[#allocation5 + $0x400] sm:$0xf0]  ;;  %v2547_v27 = vld [vmem:[#allocation5 + $0x4f4] sm:$0xf0]  ;;  %v2566_v34 = vor.u32 %v2881_v22, %v2565_v21 }
  0x9a   : > { %v2550_v37 = vor.u32 %v2874_v26, %v2547_v27  ;;  %v2467_v21 = vld [vmem:[#allocation5 + $0x454] sm:$0xf0]  ;;  %v2127_v26 = vld [vmem:[#allocation5 + $0x1ac] sm:$0xf0]  ;;  %v2894_v27 = vld [vmem:[#allocation5 + $0x584] sm:$0xf] }
  0x9b   : > { %1665 = vmatpush.bf16.msrb.mxu2 %v2666_v28  ;;  %v2230_v28 = vor.u32 %v2794_v15, %v2227_v16  ;;  %v2647_v15 = vld [vmem:[#allocation5 + $0x5bc] sm:$0xf0]  ;;  %v2350_v16 = vor.u32 %v2824_v3, %v2347_v4  ;;  %v2879_v4 = vld [vmem:[#allocation5 + $0x50c] sm:$0xf] }
  0x9c   : > { %1678 = vmatpush.bf16.msrb.mxu3 %v2030_v35  ;;  %v2914_v35 = vld [vmem:[#allocation5 + $0x624] sm:$0xf]  ;;  %v2053_v3 = vld [vmem:[#allocation5 + $0x100] sm:$0xf] }
  0x9d   : > { %1640 = vmatpush.bf16.msrb.mxu0 %v2326_v33  ;;  %1652 = vmatpush.bf16.msrb.mxu1 %v2506_v39  ;;  %v2426_v33 = vor.u32 %v2846_v20, %v2425_v19  ;;  %v2841_v39 = vld [vmem:[#allocation5 + $0x3d8] sm:$0xf0]  ;;  %v2327_v19 = vld [vmem:[#allocation5 + $0x33c] sm:$0xf0]  ;;  %v2854_v20 = vld [vmem:[#allocation5 + $0x444] sm:$0xf] }
  0x9e   : > { %v2406_v49 = vor.u32 %v2841_v39, %v2405_v38  ;;  %v2470_v30 = vor.u32 %v2854_v20, %v2467_v21  ;;  %v2107_v38 = vld [vmem:[#allocation5 + $0x184] sm:$0xf0]  ;;  %v2889_v39 = vld [vmem:[#allocation5 + $0x55c] sm:$0xf]  ;;  %v2373_v20 = vld [vmem:[#allocation5 + $0x380] sm:$0xf] }
  0x9f   : > { %1666 = vmatpush.bf16.msrb.mxu2 %v2646_v40  ;;  %v2834_v40 = vld [vmem:[#allocation5 + $0x3a4] sm:$0xf]  ;;  %v2832_v21 = vld [vmem:[#allocation5 + $0x390] sm:$0xf0] }
  0xa0   : > { %1679 = vmatpush.bf16.msrb.mxu3 %v2010_v47  ;;  %v2710_v47 = vor.u32 %v2914_v35, %v2707_v36  ;;  %v2764_v36 = vld [vmem:[#allocation5 + $0x174] sm:$0xf] }
  0xa1   : > { %1641 = vmatpush.bf16.msrb.mxu0 %v2306_v45  ;;  %1653 = vmatpush.bf16.msrb.mxu1 %v2486_v51  ;;  %v2210_v45 = vor.u32 %v2789_v29, %v2207_v32  ;;  %v2687_v51 = vld [vmem:[#allocation5 + $0x60c] sm:$0xf0]  ;;  %v2307_v32 = vld [vmem:[#allocation5 + $0x314] sm:$0xf0] }
  0xa2   : > { %v2690_v61 = vor.u32 %v2909_v50, %v2687_v51  ;;  %v2087_v50 = vld [vmem:[#allocation5 + $0x15c] sm:$0xf0]  ;;  %v2884_v51 = vld [vmem:[#allocation5 + $0x534] sm:$0xf] }
  0xa3   : > { %1667 = vmatpush.bf16.msrb.mxu2 %v2626_v52  ;;  %v2390_v52 = vor.u32 %v2834_v40, %v2387_v42  ;;  %v2607_v40 = vld [vmem:[#allocation5 + $0x56c] sm:$0xf0] }
  0xa4   : > { %1680 = vmatpush.bf16.msrb.mxu3 %v1990_v60  ;;  %v2779_v60 = vld [vmem:[#allocation5 + $0x1ec] sm:$0xf] }
  0xa5   : > { %1642 = vmatpush.bf16.msrb.mxu0 %v2286_v58  ;;  %1654 = vmatpush.bf16.msrb.mxu1 %v2466_v0  ;;  %v2507_v58 = vld [vmem:[#allocation5 + $0x4a4] sm:$0xf0]  ;;  %v2170_v9 = vor.u32 %v2779_v60, %v2167_v62  ;;  %v2839_v60 = vld [vmem:[#allocation5 + $0x3cc] sm:$0xf]  ;;  %v2090_v62 = vor.u32 %v2759_v48, %v2087_v50 }
  0xa6   : > { %v2667_v0 = vld [vmem:[#allocation5 + $0x5e4] sm:$0xf0]  ;;  %v2510_v2 = vor.u32 %v2864_v56, %v2507_v58  ;;  %v2804_v58 = vld [vmem:[#allocation5 + $0x2b4] sm:$0xf] }
  0xa7   : > { %1668 = vmatpush.bf16.msrb.mxu2 %v2606_v1  ;;  %v2370_v1 = vor.u32 %v2829_v54, %v2367_v55  ;;  %v2670_v11 = vor.u32 %v2904_v63, %v2667_v0  ;;  %v2757_v54 = vld [vmem:[#allocation5 + $0x138] sm:$0xf0]  ;;  %v2290_v55 = vor.u32 %v2809_v43, %v2287_v44  ;;  %v2393_v0 = vld [vmem:[#allocation5 + $0x3a8] sm:$0xf]  ;;  %v2193_v44 = vld [vmem:[#allocation5 + $0x218] sm:$0xf] }
  0xa8   : > { %1681 = vmatpush.bf16.msrb.mxu3 %v1970_v10  ;;  %v2774_v10 = vld [vmem:[#allocation5 + $0x1c4] sm:$0xf] }
  0xa9   : > { %1643 = vmatpush.bf16.msrb.mxu0 %v2266_v6  ;;  %1655 = vmatpush.bf16.msrb.mxu1 %v2446_v17  ;;  %v2487_v6 = vld [vmem:[#allocation5 + $0x47c] sm:$0xf0]  ;;  %v2150_v22 = vor.u32 %v2774_v10, %v2147_v13  ;;  %v2877_v13 = vld [vmem:[#allocation5 + $0x4f8] sm:$0xf0] }
  0xaa   : > { %v2490_v17 = vor.u32 %v2859_v5, %v2487_v6  ;;  %v2567_v5 = vld [vmem:[#allocation5 + $0x51c] sm:$0xf0]  ;;  %v2752_v6 = vld [vmem:[#allocation5 + $0x110] sm:$0xf0] }
  0xab   : > { %1669 = vmatpush.bf16.msrb.mxu2 %v2586_v18  ;;  %v2819_v18 = vld [vmem:[#allocation5 + $0x32c] sm:$0xf] }
  0xac   : > { %1682 = vmatpush.bf16.msrb.mxu3 %v1950_v25  ;;  %v2650_v25 = vor.u32 %v2899_v14, %v2647_v15  ;;  %v2330_v29 = vor.u32 %v2819_v18, %v2327_v19  ;;  %v2799_v15 = vld [vmem:[#allocation5 + $0x28c] sm:$0xf]  ;;  %v2570_v18 = vor.u32 %v2879_v4, %v2567_v5  ;;  %v2797_v19 = vld [vmem:[#allocation5 + $0x278] sm:$0xf0] }
  0xad   : > { %1644 = vmatpush.bf16.msrb.mxu0 %v2246_v24  ;;  %1656 = vmatpush.bf16.msrb.mxu1 %v2426_v33  ;;  %v2769_v24 = vld [vmem:[#allocation5 + $0x19c] sm:$0xf] }
  0xae   : > { %v2849_v33 = vld [vmem:[#allocation5 + $0x41c] sm:$0xf]  ;;  %v2130_v35 = vor.u32 %v2769_v24, %v2127_v26  ;;  %v2033_v24 = vld [vmem:[#allocation5 + $0xd8] sm:$0xf]  ;;  %v2747_v26 = vld [vmem:[#allocation5 + $0xe8] sm:$0xf0] }
  0xaf   : > { %1670 = vmatpush.bf16.msrb.mxu2 %v2566_v34  ;;  %v2447_v34 = vld [vmem:[#allocation5 + $0x42c] sm:$0xf0] }
  0xb0   : > { %1645 = vmatmul.bf16.vlgmr.msrb.gmra.mxu0 %v3241_v7  ;;  %1683 = vmatpush.bf16.msrb.mxu3 %v1930_v41  ;;  %v2310_v41 = vor.u32 %v2814_v31, %v2307_v32  ;;  %v2450_v42 = vor.u32 %v2849_v33, %v2447_v34  ;;  %v2374_v31 = vor.u32 %v2832_v21, %v2373_v20  ;;  %v2213_v32 = vld [vmem:[#allocation5 + $0x240] sm:$0xf]  ;;  %v2792_v33 = vld [vmem:[#allocation5 + $0x250] sm:$0xf0]  ;;  %v2353_v34 = vld [vmem:[#allocation5 + $0x358] sm:$0xf] }
  0xb1   : > { %1689 = vmatpush.bf16.msra.mxu0 %v2230_v28  ;;  %1657 = vmatpush.bf16.msrb.mxu1 %v2406_v49  ;;  %v2627_v28 = vld [vmem:[#allocation5 + $0x594] sm:$0xf0]  ;;  %v2610_v49 = vor.u32 %v2889_v39, %v2607_v40  ;;  %v2742_v39 = vld [vmem:[#allocation5 + $0xc0] sm:$0xf0]  ;;  %v2133_v21 = vld [vmem:[#allocation5 + $0x1a0] sm:$0xf] }
  0xb2   : > { %1671 = vmatmul.bf16.vlgmr.msrb.gmra.mxu2 %v3252_v23  ;;  %v2513_v40 = vld [vmem:[#allocation5 + $0x498] sm:$0xf] }
  0xb3   : > { %1715 = vmatpush.bf16.msra.mxu2 %v2550_v37  ;;  %1684 = vmatmul.bf16.vlgmr.msrb.gmra.mxu3 %v3238_v57  ;;  %v2630_v37 = vor.u32 %v2894_v27, %v2627_v28  ;;  %v2533_v28 = vld [vmem:[#allocation5 + $0x4c0] sm:$0xf] }
  0xb4   : > { %1728 = vmatpush.bf16.msra.mxu3 %v2710_v47  ;;  %1658 = vmatmul.bf16.vlgmr.msrb.gmra.mxu1 %v3243_v8  ;;  %v2110_v47 = vor.u32 %v2764_v36, %v2107_v38  ;;  %v2034_v36 = vor.u32 %v2747_v26, %v2033_v24  ;;  %v2772_v24 = vld [vmem:[#allocation5 + $0x1b0] sm:$0xf0]  ;;  %v2807_v26 = vld [vmem:[#allocation5 + $0x2c8] sm:$0xf0] }
  0xb5   : > { %1690 = vmatpush.bf16.msra.mxu0 %v2210_v45  ;;  %1702 = vmatpush.bf16.msra.mxu1 %v2390_v52  ;;  %v2844_v45 = vld [vmem:[#allocation5 + $0x3f4] sm:$0xf]  ;;  %v2587_v52 = vld [vmem:[#allocation5 + $0x544] sm:$0xf0] }
  0xb6   : > { %v2430_v56 = vor.u32 %v2844_v45, %v2427_v46  ;;  %v2590_v63 = vor.u32 %v2884_v51, %v2587_v52  ;;  %v2787_v45 = vld [vmem:[#allocation5 + $0x228] sm:$0xf0]  ;;  %v2333_v46 = vld [vmem:[#allocation5 + $0x330] sm:$0xf]  ;;  %v2737_v51 = vld [vmem:[#allocation5 + $0x98] sm:$0xf0] }
  0xb7   : > { %1716 = vmatpush.bf16.msra.mxu2 %v2530_v53  ;;  %v2073_v53 = vld [vmem:[#allocation5 + $0x128] sm:$0xf]  ;;  %v2493_v52 = vld [vmem:[#allocation5 + $0x470] sm:$0xf] }
  0xb8   : > { %1729 = vmatpush.bf16.msra.mxu3 %v2690_v61  ;;  %v2407_v61 = vld [vmem:[#allocation5 + $0x3dc] sm:$0xf0] }
  0xb9   : > { %1691 = vmatpush.bf16.msra.mxu0 %v2190_v59  ;;  %1703 = vmatpush.bf16.msra.mxu1 %v2370_v1  ;;  %v2267_v59 = vld [vmem:[#allocation5 + $0x2c4] sm:$0xf0]  ;;  %v2837_v1 = vld [vmem:[#allocation5 + $0x3b8] sm:$0xf0]  ;;  %v2410_v10 = vor.u32 %v2839_v60, %v2407_v61 }
  0xba   : > { %v2394_v14 = vor.u32 %v2837_v1, %v2393_v0  ;;  %v2817_v60 = vld [vmem:[#allocation5 + $0x318] sm:$0xf0]  ;;  %v2732_v0 = vld [vmem:[#allocation5 + $0x70] sm:$0xf0]  ;;  %v2473_v1 = vld [vmem:[#allocation5 + $0x448] sm:$0xf] }
  0xbb   : > { %1717 = vmatpush.bf16.msra.mxu2 %v2510_v2  ;;  %v2074_v2 = vor.u32 %v2757_v54, %v2073_v53  ;;  %v2862_v53 = vld [vmem:[#allocation5 + $0x480] sm:$0xf0]  ;;  %v2194_v54 = vor.u32 %v2787_v45, %v2193_v44 }
  0xbc   : > { %1730 = vmatpush.bf16.msra.mxu3 %v2670_v11  ;;  %v2553_v11 = vld [vmem:[#allocation5 + $0x4e8] sm:$0xf] }
  0xbd   : > { %1692 = vmatpush.bf16.msra.mxu0 %v2170_v9  ;;  %1704 = vmatpush.bf16.msra.mxu1 %v2350_v16  ;;  %v2270_v9 = vor.u32 %v2804_v58, %v2267_v59  ;;  %v2247_v16 = vld [vmem:[#allocation5 + $0x29c] sm:$0xf0]  ;;  %v2782_v58 = vld [vmem:[#allocation5 + $0x200] sm:$0xf0]  ;;  %v2313_v59 = vld [vmem:[#allocation5 + $0x308] sm:$0xf] }
  0xbe   : > { %v2250_v27 = vor.u32 %v2799_v15, %v2247_v16  ;;  %v2314_v4 = vor.u32 %v2817_v60, %v2313_v59  ;;  %v2727_v16 = vld [vmem:[#allocation5 + $0x48] sm:$0xf0] }
  0xbf   : > { %1718 = vmatpush.bf16.msra.mxu2 %v2490_v17  ;;  %v2233_v17 = vld [vmem:[#allocation5 + $0x268] sm:$0xf] }
  0xc0   : > { %1731 = vmatpush.bf16.msra.mxu3 %v2650_v25  ;;  %v2554_v25 = vor.u32 %v2877_v13, %v2553_v11  ;;  %v2812_v11 = vld [vmem:[#allocation5 + $0x2f0] sm:$0xf0] }
  0xc1   : > { %1693 = vmatpush.bf16.msra.mxu0 %v2150_v22  ;;  %1705 = vmatpush.bf16.msra.mxu1 %v2330_v29  ;;  %v2054_v22 = vor.u32 %v2752_v6, %v2053_v3  ;;  %v2872_v29 = vld [vmem:[#allocation5 + $0x4d0] sm:$0xf0]  ;;  %v2153_v6 = vld [vmem:[#allocation5 + $0x1c8] sm:$0xf] }
  0xc2   : > { %v2534_v38 = vor.u32 %v2872_v29, %v2533_v28  ;;  %v1933_v28 = vld [vmem:[#allocation5 + $0x10] sm:$0xf] }
  0xc3   : > { %1719 = vmatpush.bf16.msra.mxu2 %v2470_v30  ;;  %v2234_v30 = vor.u32 %v2797_v19, %v2233_v17  ;;  %v2453_v17 = vld [vmem:[#allocation5 + $0x420] sm:$0xf] }
  0xc4   : > { %1732 = vmatpush.bf16.msra.mxu3 %v2630_v37  ;;  %v2013_v37 = vld [vmem:[#allocation5 + $0xb0] sm:$0xf] }
  0xc5   : > { %1694 = vmatpush.bf16.msra.mxu0 %v2130_v35  ;;  %1706 = vmatpush.bf16.msra.mxu1 %v2310_v41  ;;  %v2827_v35 = vld [vmem:[#allocation5 + $0x368] sm:$0xf0]  ;;  %v2014_v48 = vor.u32 %v2742_v39, %v2013_v37  ;;  %v2113_v39 = vld [vmem:[#allocation5 + $0x178] sm:$0xf] }
  0xc6   : > { %v2867_v41 = vld [vmem:[#allocation5 + $0x4a8] sm:$0xf0]  ;;  %v2354_v43 = vor.u32 %v2827_v35, %v2353_v34  ;;  %v2713_v34 = vld [vmem:[#allocation5 + $0x628] sm:$0xf]  ;;  %v2917_v35 = vld [vmem:[#allocation5 + $0x638] sm:$0xf0] }
  0xc7   : > { %1720 = vmatpush.bf16.msra.mxu2 %v2450_v42  ;;  %v2214_v42 = vor.u32 %v2792_v33, %v2213_v32  ;;  %v2514_v50 = vor.u32 %v2867_v41, %v2513_v40  ;;  %v2847_v32 = vld [vmem:[#allocation5 + $0x408] sm:$0xf0] }
  0xc8   : > { %1733 = vmatpush.bf16.msra.mxu3 %v2610_v49  ;;  %v1993_v49 = vld [vmem:[#allocation5 + $0x88] sm:$0xf]  ;;  %v2767_v41 = vld [vmem:[#allocation5 + $0x188] sm:$0xf0] }
  0xc9   : > { %1695 = vmatpush.bf16.msra.mxu0 %v2110_v47  ;;  %1707 = vmatpush.bf16.msra.mxu1 %v2290_v55  ;;  %v2822_v47 = vld [vmem:[#allocation5 + $0x340] sm:$0xf0]  ;;  %v1994_v61 = vor.u32 %v2737_v51, %v1993_v49  ;;  %v2693_v49 = vld [vmem:[#allocation5 + $0x600] sm:$0xf]  ;;  %v2114_v51 = vor.u32 %v2767_v41, %v2113_v39 }
  0xca   : > { %v2334_v55 = vor.u32 %v2822_v47, %v2333_v46  ;;  %v2714_v46 = vor.u32 %v2917_v35, %v2713_v34  ;;  %v2413_v47 = vld [vmem:[#allocation5 + $0x3d0] sm:$0xf] }
  0xcb   : > { %1721 = vmatpush.bf16.msra.mxu2 %v2430_v56  ;;  %v2173_v56 = vld [vmem:[#allocation5 + $0x1f0] sm:$0xf] }
  0xcc   : > { %1734 = vmatpush.bf16.msra.mxu3 %v2590_v63  ;;  %v2494_v63 = vor.u32 %v2862_v53, %v2493_v52  ;;  %v2174_v3 = vor.u32 %v2782_v58, %v2173_v56 }
  0xcd   : > { %1696 = vmatpush.bf16.msra.mxu0 %v2090_v62  ;;  %1708 = vmatpush.bf16.msra.mxu1 %v2270_v9  ;;  %v1973_v62 = vld [vmem:[#allocation5 + $0x60] sm:$0xf]  ;;  %v3270_v5 = vpop.f32.mrf.mxu0  ;;  %v2777_v9 = vld [vmem:[#allocation5 + $0x1d8] sm:$0xf0] }
  0xce   : > { %v1974_v13 = vor.u32 %v2732_v0, %v1973_v62  ;;  %v2154_v19 = vor.u32 %v2777_v9, %v2153_v6  ;;  %v2907_v62 = vld [vmem:[#allocation5 + $0x5e8] sm:$0xf0]  ;;  %v2633_v9 = vld [vmem:[#allocation5 + $0x588] sm:$0xf] }
  0xcf   : > { %1722 = vmatpush.bf16.msra.mxu2 %v2410_v10  ;;  %v2293_v10 = vld [vmem:[#allocation5 + $0x2e0] sm:$0xf] }
  0xd0   : > { %1697 = vmatmul.bf16.vlgmr.msra.gmra.mxu0 %v3246_v12  ;;  %1735 = vmatpush.bf16.msra.mxu3 %v2570_v18  ;;  %v2852_v18 = vld [vmem:[#allocation5 + $0x430] sm:$0xf0]  ;;  %v2294_v20 = vor.u32 %v2812_v11, %v2293_v10  ;;  %v2897_v10 = vld [vmem:[#allocation5 + $0x598] sm:$0xf0] }
  0xd1   : > { %1741 = vmatpush.bf16.msrb.mxu0 %v2074_v2  ;;  %1709 = vmatpush.bf16.msra.mxu1 %v2250_v27  ;;  %v2857_v2 = vld [vmem:[#allocation5 + $0x458] sm:$0xf0]  ;;  %v2454_v29 = vor.u32 %v2852_v18, %v2453_v17  ;;  %v2887_v17 = vld [vmem:[#allocation5 + $0x548] sm:$0xf0] }
  0xd2   : > { %1723 = vmatmul.bf16.vlgmr.msra.gmra.mxu2 %v3243_v8  ;;  %v2474_v15 = vor.u32 %v2857_v2, %v2473_v1 }
  0xd3   : > { %1767 = vmatpush.bf16.msrb.mxu2 %v2394_v14  ;;  %1736 = vmatmul.bf16.vlgmr.msra.gmra.mxu3 %v3252_v23  ;;  %v1953_v14 = vld [vmem:[#allocation5 + $0x38] sm:$0xf] }
  0xd4   : > { %1780 = vmatpush.bf16.msrb.mxu3 %v2554_v25  ;;  %1710 = vmatmul.bf16.vlgmr.msra.gmra.mxu1 %v3241_v7  ;;  %v2273_v25 = vld [vmem:[#allocation5 + $0x2b8] sm:$0xf]  ;;  %v1954_v27 = vor.u32 %v2727_v16, %v1953_v14  ;;  %v2613_v14 = vld [vmem:[#allocation5 + $0x560] sm:$0xf] }
  0xd5   : > { %1742 = vmatpush.bf16.msrb.mxu0 %v2054_v22  ;;  %1754 = vmatpush.bf16.msrb.mxu1 %v2234_v30  ;;  %v1503_v22 = vpop.f32.mrf.mxu1  ;;  %v2722_v30 = vld [vmem:[#allocation5 + $0x20] sm:$0xf0]  ;;  %v2274_v37 = vor.u32 %v2807_v26, %v2273_v25  ;;  %v1516_v40 = vpop.f32.mrf.mxu2  ;;  %v2593_v16 = vld [vmem:[#allocation5 + $0x538] sm:$0xf] }
  0xd6   : > { %v1529_v33 = vpop.f32.mrf.mxu3  ;;  %v1934_v44 = vor.u32 %v2722_v30, %v1933_v28  ;;  %v1504_v59 = vadd.f32 %v1503_v22, %v3270_v5 }
  0xd7   : > { %1768 = vmatpush.bf16.msrb.mxu2 %v2374_v31  ;;  %v2433_v31 = vld [vmem:[#allocation5 + $0x3f8] sm:$0xf] }
  0xd8   : > { %1781 = vmatpush.bf16.msrb.mxu3 %v2534_v38  ;;  %v1492_v38 = vpop.f32.mrf.mxu0  ;;  %v2434_v45 = vor.u32 %v2847_v32, %v2433_v31  ;;  %v1517_v2 = vadd.f32 %v1516_v40, %v1504_v59 }
  0xd9   : > { %1743 = vmatpush.bf16.msrb.mxu0 %v2034_v36  ;;  %1755 = vmatpush.bf16.msrb.mxu1 %v2214_v42  ;;  %v2134_v36 = vor.u32 %v2772_v24, %v2133_v21  ;;  %v2253_v42 = vld [vmem:[#allocation5 + $0x290] sm:$0xf]  ;;  %v2882_v21 = vld [vmem:[#allocation5 + $0x520] sm:$0xf0] }
  0xda   : > { %v1530_v6 = vadd.f32 %v1529_v33, %v1517_v2 }
  0xdb   : > { %1769 = vmatpush.bf16.msrb.mxu2 %v2354_v43  ;;  %v2802_v43 = vld [vmem:[#allocation5 + $0x2a0] sm:$0xf0] }
  0xdc   : > { %1782 = vmatpush.bf16.msrb.mxu3 %v2514_v50  ;;  %v2912_v50 = vld [vmem:[#allocation5 + $0x610] sm:$0xf0]  ;;  %v2254_v52 = vor.u32 %v2802_v43, %v2253_v42 }
  0xdd   : > { %1744 = vmatpush.bf16.msrb.mxu0 %v2014_v48  ;;  %1756 = vmatpush.bf16.msrb.mxu1 %v2194_v54  ;;  %v2842_v48 = vld [vmem:[#allocation5 + $0x3e0] sm:$0xf0]  ;;  %v1505_v53 = vpop.f32.mrf.mxu1  ;;  %v2093_v54 = vld [vmem:[#allocation5 + $0x150] sm:$0xf]  ;;  %v2694_v58 = vor.u32 %v2912_v50, %v2693_v49  ;;  %v1518_v0 = vpop.f32.mrf.mxu2 }
  0xde   : > { %v2414_v56 = vor.u32 %v2842_v48, %v2413_v47  ;;  %v1531_v60 = vpop.f32.mrf.mxu3 }
  0xdf   : > { %1770 = vmatpush.bf16.msrb.mxu2 %v2334_v55  ;;  %v2762_v55 = vld [vmem:[#allocation5 + $0x160] sm:$0xf0] }
  0xe0   : > { %1783 = vmatpush.bf16.msrb.mxu3 %v2494_v63  ;;  %v2094_v63 = vor.u32 %v2762_v55, %v2093_v54 }
  0xe1   : > { %1745 = vmatpush.bf16.msrb.mxu0 %v1994_v61  ;;  %1757 = vmatpush.bf16.msrb.mxu1 %v2174_v3  ;;  %v2673_v61 = vld [vmem:[#allocation5 + $0x5d8] sm:$0xf]  ;;  %v2653_v3 = vld [vmem:[#allocation5 + $0x5b0] sm:$0xf] }
  0xe2   : > { %v2674_v1 = vor.u32 %v2907_v62, %v2673_v61 }
  0xe3   : > { %1771 = vmatpush.bf16.msrb.mxu2 %v2314_v4  ;;  %v2902_v4 = vld [vmem:[#allocation5 + $0x5c0] sm:$0xf0] }
  0xe4   : > { %1784 = vmatpush.bf16.msrb.mxu3 %v2474_v15  ;;  %v2654_v5 = vor.u32 %v2902_v4, %v2653_v3  ;;  %v2892_v15 = vld [vmem:[#allocation5 + $0x570] sm:$0xf0] }
  0xe5   : > { %1746 = vmatpush.bf16.msrb.mxu0 %v1974_v13  ;;  %1758 = vmatpush.bf16.msrb.mxu1 %v2154_v19  ;;  %v2634_v13 = vor.u32 %v2897_v10, %v2633_v9 }
  0xe7   : > { %1772 = vmatpush.bf16.msrb.mxu2 %v2294_v20  ;;  %v2573_v20 = vld [vmem:[#allocation5 + $0x510] sm:$0xf] }
  0xe8   : > { %1785 = vmatpush.bf16.msrb.mxu3 %v2454_v29  ;;  %v2574_v24 = vor.u32 %v2882_v21, %v2573_v20 }
  0xe9   : > { %1747 = vmatpush.bf16.msrb.mxu0 %v1954_v27  ;;  %1759 = vmatpush.bf16.msrb.mxu1 %v2134_v36 }
  0xeb   : > { %1773 = vmatpush.bf16.msrb.mxu2 %v2274_v37 }
  0xec   : > { %1786 = vmatpush.bf16.msrb.mxu3 %v2434_v45 }
  0xed   : > { %1748 = vmatpush.bf16.msrb.mxu0 %v1934_v44  ;;  %1760 = vmatpush.bf16.msrb.mxu1 %v2114_v51 }
  0xef   : > { %1774 = vmatpush.bf16.msrb.mxu2 %v2254_v52 }
  0xf0   : > { %1749 = vmatmul.bf16.vlgmr.msrb.gmra.mxu0 %v3238_v57  ;;  %1787 = vmatpush.bf16.msrb.mxu3 %v2414_v56  ;;  %v1542_v57 = vpop.f32.mrf.mxu0 }
  0xf1   : > { %1793 = vmatpush.bf16.msra.mxu0 %v2714_v46  ;;  %1761 = vmatpush.bf16.msrb.mxu1 %v2094_v63  ;;  %v1543_v11 = vadd.f32 %v1542_v57, %v1530_v6 }
  0xf2   : > { %1775 = vmatmul.bf16.vlgmr.msrb.gmra.mxu2 %v3241_v7  ;;  %v2614_v7 = vor.u32 %v2892_v15, %v2613_v14 }
  0xf3   : > { %1788 = vmatmul.bf16.vlgmr.msrb.gmra.mxu3 %v3243_v8  ;;  %1806 = vst [vmem:[%s3278_s27] sm:$0xff] %v1543_v11  ;;  %v1555_v8 = vpop.f32.mrf.mxu1 }
  0xf4   : > { %1762 = vmatmul.bf16.vlgmr.msrb.gmra.mxu1 %v3246_v12  ;;  %v2594_v12 = vor.u32 %v2887_v17, %v2593_v16 }
  0xf5   : > { %1794 = vmatpush.bf16.msra.mxu0 %v2694_v58  ;;  %v1568_v19 = vpop.f32.mrf.mxu2 }
  0xf6   : > { %v1581_v22 = vpop.f32.mrf.mxu3  ;;  %v1569_v28 = vadd.f32 %v1568_v19, %v1555_v8 }
  0xf8   : > { %v1544_v18 = vpop.f32.mrf.mxu0  ;;  %v1582_v29 = vadd.f32 %v1581_v22, %v1569_v28 }
  0xf9   : > { %1795 = vmatpush.bf16.msra.mxu0 %v2674_v1 }
  0xfb   : > { %v1557_v25 = vpop.f32.mrf.mxu1 }
  0xfd   : > { %1796 = vmatpush.bf16.msra.mxu0 %v2654_v5  ;;  %v1570_v26 = vpop.f32.mrf.mxu2 }
  0xfe   : > { %v1583_v27 = vpop.f32.mrf.mxu3 }
 0x101   : > { %1797 = vmatpush.bf16.msra.mxu0 %v2634_v13 }
 0x105   : > { %1798 = vmatpush.bf16.msra.mxu0 %v2614_v7 }
 0x109   : > { %1799 = vmatpush.bf16.msra.mxu0 %v2594_v12 }
 0x10d   : > { %1800 = vmatpush.bf16.msra.mxu0 %v2574_v24  ;;  %v1594_v30 = vpop.f32.mrf.mxu0 }
 0x10e   : > { %v1595_v31 = vadd.f32 %v1594_v30, %v1582_v29 }
 0x110   : > { %1801 = vmatmul.bf16.vlgmr.msra.gmra.mxu0 %v3252_v23 }
 0x111   : > { %v1607_v32 = vpop.f32.mrf.mxu1 }
 0x112   : > { %v1608_v34 = vadd.f32 %v1607_v32, %v1595_v31 }
 0x114   : > { %1807 = vst [vmem:[%s3278_s27 + $0x8] sm:$0xff] %v1608_v34 }
 0x115   : > { %v1596_v33 = vpop.f32.mrf.mxu0  ;;  %v1620_v35 = vpop.f32.mrf.mxu2 }
 0x116   : > { %v1633_v36 = vpop.f32.mrf.mxu3 }
 0x117   : > { %v1634_v40 = vadd.f32 %v1633_v36, %v1620_v35 }
 0x119   : > { %v1609_v37 = vpop.f32.mrf.mxu1 }
 0x11d   : > { %v1622_v38 = vpop.f32.mrf.mxu2 }
 0x11e   : > { %v1635_v39 = vpop.f32.mrf.mxu3 }
 0x12d   : > { %v1646_v41 = vpop.f32.mrf.mxu0 }
 0x12e   : > { %v1647_v42 = vadd.f32 %v1646_v41, %v1634_v40 }
 0x131   : > { %v1659_v43 = vpop.f32.mrf.mxu1 }
 0x132   : > { %v1660_v23 = vadd.f32 %v1659_v43, %v1647_v42 }
 0x135   : > { %v1648_v44 = vpop.f32.mrf.mxu0  ;;  %v1672_v45 = vpop.f32.mrf.mxu2 }
 0x136   : > { %v1673_v46 = vadd.f32 %v1672_v45, %v1660_v23  ;;  %v1685_v47 = vpop.f32.mrf.mxu3 }
 0x138   : > { %1808 = vst [vmem:[%s3278_s27 + $0x10] sm:$0xff] %v1673_v46 }
 0x139   : > { %v1661_v48 = vpop.f32.mrf.mxu1 }
 0x13d   : > { %v1674_v49 = vpop.f32.mrf.mxu2 }
 0x13e   : > { %v1687_v50 = vpop.f32.mrf.mxu3 }
 0x14d   : > { %v1698_v51 = vpop.f32.mrf.mxu0 }
 0x14e   : > { %v1699_v52 = vadd.f32 %v1698_v51, %v1685_v47 }
 0x151   : > { %v1711_v53 = vpop.f32.mrf.mxu1 }
 0x152   : > { %v1712_v55 = vadd.f32 %v1711_v53, %v1699_v52 }
 0x155   : > { %v1700_v54 = vpop.f32.mrf.mxu0  ;;  %v1724_v56 = vpop.f32.mrf.mxu2 }
 0x156   : > { %v1725_v58 = vadd.f32 %v1724_v56, %v1712_v55  ;;  %v1737_v59 = vpop.f32.mrf.mxu3 }
 0x158   : > { %v1738_v60 = vadd.f32 %v1737_v59, %v1725_v58 }
 0x159   : > { %v1713_v61 = vpop.f32.mrf.mxu1 }
 0x15a   : > { %1809 = vst [vmem:[%s3278_s27 + $0x18] sm:$0xff] %v1738_v60 }
 0x15d   : > { %v1726_v62 = vpop.f32.mrf.mxu2 }
 0x15e   : > { %v1739_v63 = vpop.f32.mrf.mxu3 }
 0x16d   : > { %v1750_v0 = vpop.f32.mrf.mxu0 }
 0x171   : > { %v1763_v1 = vpop.f32.mrf.mxu1 }
 0x172   : > { %v1764_v10 = vadd.f32 %v1763_v1, %v1750_v0 }
 0x175   : > { %v1752_v2 = vpop.f32.mrf.mxu0  ;;  %v1776_v3 = vpop.f32.mrf.mxu2 }
 0x176   : > { %v1789_v4 = vpop.f32.mrf.mxu3  ;;  %v1777_v57 = vadd.f32 %v1776_v3, %v1764_v10 }
 0x178   : > { %v1790_v11 = vadd.f32 %v1789_v4, %v1777_v57 }
 0x179   : > { %v1765_v5 = vpop.f32.mrf.mxu1 }
 0x17d   : > { %v1778_v6 = vpop.f32.mrf.mxu2 }
 0x17e   : > { %v1791_v9 = vpop.f32.mrf.mxu3 }
 0x18d   : > { %v1802_v13 = vpop.f32.mrf.mxu0 }
 0x18e   : > { %v1803_v14 = vadd.f32 %v1802_v13, %v1790_v11 }
 0x190   : > { %1810 = vst [vmem:[%s3278_s27 + $0x20] sm:$0xff] %v1803_v14 }
 0x191   : > { %3069 = shalt.err (!%p3066_p9)
}
 0x192   : > { %2929 = dma.vmem_to_hbm [thread:$0]  (%p3192_p0), %s1826_s15, 640, %s1828_s18, %s1812_s19  }
 0x195   : > { %v1804_v15 = vpop.f32.mrf.mxu0 }
 0x196 PF: > { %s1839_s29 = sand.u32 1, %s3100_s9   ;;  %p3328_p10 = scmp.ge.s32.totalorder %s3112_s12, 2 }
 0x197   : > { %s1840_s3 = scalar_lea.sflag [#allocation4], %s1839_s29 }
 0x198   : > { %p2940_p11 = pnand %p3328_p10, %p3198_p6 }
 0x19a   : > { %p2941_p12 = pneg %p2940_p11 }
 0x19c   : > { %3095 = dma.done.wait (%p2941_p12), %s1840_s3, 640  }
 0x19d   : > { %3097 = vsyncadd (%p2941_p12), %s1840_s3, 4294966656  ;;  %p16_p2 = scmp.ge.s32.totalorder %s3172_s23, 4   ;;  %s3329_s9 = smov %s3104_s10 }
 0x19e   : > { %s3330_s10 = smov %s3108_s11  ;;  %s3331_s11 = smov %s3184_s26 }
 0x19f   : > { %s3332_s12 = smov %s3172_s23  ;;  %18 = sbr.rel (!%p16_p2) target bundleno = 6 (0x6), region = 77 }
 0x1a4   :  { %1846 = vsyncpa [#allocation3], 1 }
 0x1a5   :  { %1848 = vsyncpa [#allocation3 + $0x1], 1 }
 0x1a6   :  { %1849 = vsyncpa [#allocation6], 1 }
 0x1a7   :  { %1850 = vsyncpa [#allocation4], 1 }
 0x1a8   :  { %1852 = vsyncpa [#allocation4 + $0x1], 1 }

</bundles_post_ra>
